<compile_context>
chip_gen: v7x
topology: tpu7x:2x2x1
jax: 0.10.0
libtpu: 0.0.40
codegen_flags: <defaults>
</compile_context>

<pallas_src>
import math
import jax
import jax.numpy as jnp
from jax.experimental import pallas as pl
from jax.experimental.pallas import tpu as pltpu


def fused_encoder_kernel(qkv0_ref, wproj_ref, bproj_ref, o_ref):
    """Whole encoder (all layers, whole batch) in one grid-less invocation.

    qkv0_ref:  (B*S, 3H)  layer-0 qkv activations (embedding + qkv_0 folded at pack
                          time), columns permuted to [q heads | k heads | v heads].
    wproj_ref: (L, H, 3H) per-layer fused projection W_out_l^T @ W_qkv_{l+1}^T
                          (permuted); last layer = [W_out_{L-1}^T | 0] zero-padded.
    bproj_ref: (L, 1, 3H) matching fused biases.
    o_ref:     (B, S, H)  final encoder output.
    """
    B, S, H = o_ref.shape
    L = wproj_ref.shape[0]

    qkv = qkv0_ref[...]                                  # (B*S, 3H)
    proj = qkv                                           # overwritten below (L >= 1)

    for l in range(L):                                   # L static & tiny -> full unroll
        # Head-major relayout so the softmax reduction axis j sits on lanes.
        # TODO(synk): one small cross-lane op per layer; if it ever shows on the
        # critical path, produce head-major output straight from the MXU instead.
        qkv_t = jnp.transpose(qkv.reshape(B, S, 3 * H), (0, 2, 1))      # (B, 3H, S)
        q = qkv_t[:, 0 * H:1 * H, :].reshape(B * H, S)                  # (B*H, S)
        k = qkv_t[:, 1 * H:2 * H, :].reshape(B * H, S)
        v = qkv_t[:, 2 * H:3 * H, :].reshape(B * H, S)

        # head_dim == 1 -> scores[bh,i,j] = q[bh,i]*k[bh,j]; sqrt(d_k) == 1 (no scale).
        scores = q[:, :, None] * k[:, None, :]                          # (B*H, S, S), j on lanes
        m = jnp.max(scores, axis=-1, keepdims=True)
        e = jnp.exp(scores - m)
        denom = jnp.sum(e, axis=-1)                                     # (B*H, S)
        num = jnp.sum(e * v[:, None, :], axis=-1)                       # (B*H, S)
        values = num / denom                                            # deferred, exact normalization

        # torch quirk: values (B,H,S,1) reshaped straight to (B,S,H) (no transpose
        # back).  `values` is (B,H,S) flattened, so this row-major reshape
        # reproduces the torch semantics exactly.
        linear_in = values.reshape(B * S, H)                            # (B*S, H)

        # Fused linear: layer l's output projection algebraically folded with layer
        # l+1's qkv projection (done once at pack time).  Last layer: plain output
        # projection, zero-padded to 3H columns so the loop stays uniform.
        proj = jnp.dot(linear_in, wproj_ref[l],
                       preferred_element_type=jnp.float32) + bproj_ref[l]   # (B*S, 3H)
        qkv = proj

    o_ref[...] = proj[:, :H].reshape(B, S, H).astype(o_ref.dtype)


def encoder_fused_pallas(qkv0, wproj_all, bproj_all, out_shape):
    """qkv0: (B*S, 3H) f32 -> (B, S, H) f32.  One grid-less pallas_call, everything VMEM."""
    return pl.pallas_call(
        fused_encoder_kernel,
        out_shape=jax.ShapeDtypeStruct(out_shape, jnp.float32),
        in_specs=[
            pl.BlockSpec(memory_space=pltpu.MemorySpace.VMEM),   # layer-0 qkv activations
            pl.BlockSpec(memory_space=pltpu.MemorySpace.VMEM),   # stacked fused weights
            pl.BlockSpec(memory_space=pltpu.MemorySpace.VMEM),   # stacked fused biases
        ],
        out_specs=pl.BlockSpec(memory_space=pltpu.MemorySpace.VMEM),
        compiler_params=pltpu.CompilerParams(vmem_limit_bytes=32 * 1024 * 1024),
    )(qkv0, wproj_all, bproj_all)


def init_params(key, num_heads, num_layers, vocab_size):
    """Deterministic torch-style parameters (Linear uniform bounds)."""
    H = num_heads
    keys = jax.random.split(key, 1 + 4 * num_layers)
    emb_table = jax.random.normal(keys[0], (vocab_size, H), jnp.float32)
    layers = []
    for l in range(num_layers):
        kq, kbq, ko, kbo = keys[1 + 4 * l:1 + 4 * (l + 1)]
        bound = 1.0 / math.sqrt(H)
        wqkv = jax.random.uniform(kq, (3 * H, H), jnp.float32, -bound, bound)
        bqkv = jax.random.uniform(kbq, (3 * H,), jnp.float32, -bound, bound)
        wout = jax.random.uniform(ko, (H, H), jnp.float32, -bound, bound)
        bout = jax.random.uniform(kbo, (H,), jnp.float32, -bound, bound)
        layers.append((wqkv, bqkv, wout, bout))
    return emb_table, layers


def pack_params(emb_table, layers, num_heads):
    """One-time (init-time) packing: permute, transpose, and FOLD adjacent linears.

    Returns:
      table_qkv: (vocab, 3H)  embedding table pre-multiplied by layer-0 qkv projection.
      wproj_all: (L, H, 3H)   fused W_out_l^T @ W_qkv_{l+1}^T (last layer zero-padded).
      bproj_all: (L, 1, 3H)   fused biases.
    """
    H = num_heads
    L = len(layers)
    # Original qkv output feature for (head h, component c) is 3*h + c (head_dim == 1).
    # Permute columns into contiguous blocks [all q | all k | all v].
    perm = jnp.concatenate([3 * jnp.arange(H), 3 * jnp.arange(H) + 1, 3 * jnp.arange(H) + 2])

    def qkv_t_perm(wqkv):                      # (3H, H) -> (H, 3H) permuted
        return wqkv.T[:, perm]

    wq0, bq0 = layers[0][0], layers[0][1]
    table_qkv = emb_table @ qkv_t_perm(wq0) + bq0[perm]            # (vocab, 3H)

    wprojs, bprojs = [], []
    for l in range(L):
        wout, bout = layers[l][2], layers[l][3]
        if l + 1 < L:
            wq_next, bq_next = layers[l + 1][0], layers[l + 1][1]
            wt = qkv_t_perm(wq_next)                               # (H, 3H)
            wprojs.append(wout.T @ wt)                             # (H, 3H)
            bprojs.append(bout @ wt + bq_next[perm])               # (3H,)
        else:
            wprojs.append(jnp.pad(wout.T, ((0, 0), (0, 2 * H))))   # (H, 3H)
            bprojs.append(jnp.pad(bout, (0, 2 * H)))               # (3H,)
    wproj_all = jnp.stack(wprojs)                                  # (L, H, 3H)
    bproj_all = jnp.stack([b.reshape(1, 3 * H) for b in bprojs])   # (L, 1, 3H)
    return table_qkv, wproj_all, bproj_all


def encoder_forward(token_ids, table_qkv, wproj_all, bproj_all):
    """Full Encoder.forward: folded-embedding gather (XLA glue) + one fused Pallas kernel."""
    B, S = token_ids.shape
    H = wproj_all.shape[1]
    # TODO(synk): integer embedding gather stays in XLA glue (jnp.take).
    qkv0 = jnp.take(table_qkv, token_ids.reshape(B * S), axis=0)   # (B*S, 3H)
    return encoder_fused_pallas(qkv0, wproj_all, bproj_all, (B, S, H))


def torch_like_reference(token_ids, emb_table, layers, num_heads):
    """Pure-JAX transcription of the PyTorch forward (for verification, unfolded)."""
    H = num_heads
    head_dim = 1
    x = jnp.take(emb_table, token_ids, axis=0)
    B, S, D = x.shape
    for (wqkv, bqkv, wout, bout) in layers:
        qkv = x @ wqkv.T + bqkv                          # (B, S, 3D)
        qkv = qkv.reshape(B, S, H, 3 * head_dim)
        qkv = jnp.transpose(qkv, (0, 2, 1, 3))           # (B, H, S, 3*hd)
        q, k, v = jnp.split(qkv, 3, axis=-1)
        scaled = jnp.einsum("bhid,bhjd->bhij", q, k) / math.sqrt(q.shape[-1])
        attn = jax.nn.softmax(scaled, axis=-1)
        values = jnp.einsum("bhij,bhjd->bhid", attn, v)  # (B, H, S, hd)
        values = values.reshape(B, S, H * head_dim)      # torch reshape (no transpose back)
        x = values @ wout.T + bout
    return x


if __name__ == "__main__":
    # Small, shape-consistent config.  d_model / ffn_hidden / drop_prob are unused by
    # the reference forward pass (EncoderLayer only builds MHA with d_model=num_heads).
    B, S = 2, 8
    num_heads = 8          # == per-layer model dim (head_dim = 1)
    num_layers = 2
    vocab_size = 16

    key = jax.random.PRNGKey(0)
    kp, kx = jax.random.split(key)
    emb_table, layers = init_params(kp, num_heads, num_layers, vocab_size)
    packed = pack_params(emb_table, layers, num_heads)   # hoisted out of the hot path
    token_ids = jax.random.randint(kx, (B, S), 0, vocab_size, dtype=jnp.int32)

    fwd = jax.jit(encoder_forward)
    out = jax.block_until_ready(fwd(token_ids, *packed))

    ref = torch_like_reference(token_ids, emb_table, layers, num_heads)
    assert out.shape == (B, S, num_heads), out.shape
    assert jnp.allclose(out, ref, rtol=1e-5, atol=1e-5), float(jnp.max(jnp.abs(out - ref)))

    print("KERNEL_OK")
</pallas_src>

<mosaic_0001>
module attributes {stable_mosaic.version = 11 : i64} {
  func.func @fused_encoder_kernel(%arg0: memref<16x24xf32, #tpu.memory_space<vmem>>, %arg1: memref<2x8x24xf32, #tpu.memory_space<vmem>>, %arg2: memref<2x1x24xf32, #tpu.memory_space<vmem>>, %arg3: memref<2x8x8xf32, #tpu.memory_space<vmem>>) attributes {dimension_semantics = [], scalar_prefetch = 0 : i64, scratch_operands = 0 : i64, tpu.core_type = #tpu.core_type<tc>} {
    %c0 = arith.constant 0 : index
    %c0_0 = arith.constant 0 : index
    %0 = vector.load %arg0[%c0, %c0_0] : memref<16x24xf32, #tpu.memory_space<vmem>>, vector<16x24xf32>
    %1 = vector.shape_cast %0 : vector<16x24xf32> to vector<2x8x24xf32>
    %2 = tpu.transpose %1, [0, 2, 1] : vector<2x8x24xf32> -> vector<2x24x8xf32>
    %3 = vector.extract_strided_slice %2 {offsets = [0, 0, 0], sizes = [2, 8, 8], strides = [1, 1, 1]} : vector<2x24x8xf32> to vector<2x8x8xf32>
    %4 = vector.shape_cast %3 : vector<2x8x8xf32> to vector<16x8xf32>
    %5 = vector.extract_strided_slice %2 {offsets = [0, 8, 0], sizes = [2, 8, 8], strides = [1, 1, 1]} : vector<2x24x8xf32> to vector<2x8x8xf32>
    %6 = vector.shape_cast %5 : vector<2x8x8xf32> to vector<16x8xf32>
    %7 = vector.extract_strided_slice %2 {offsets = [0, 16, 0], sizes = [2, 8, 8], strides = [1, 1, 1]} : vector<2x24x8xf32> to vector<2x8x8xf32>
    %8 = vector.shape_cast %7 : vector<2x8x8xf32> to vector<16x8xf32>
    %9 = vector.shape_cast %4 : vector<16x8xf32> to vector<16x8x1xf32>
    %10 = vector.shape_cast %6 : vector<16x8xf32> to vector<16x1x8xf32>
    %11 = vector.broadcast %9 : vector<16x8x1xf32> to vector<16x8x8xf32>
    %12 = vector.broadcast %10 : vector<16x1x8xf32> to vector<16x8x8xf32>
    %13 = arith.mulf %11, %12 : vector<16x8x8xf32>
    %cst = arith.constant dense<0xFF800000> : vector<16x8xf32>
    %14 = vector.multi_reduction <maximumf>, %13, %cst [2] : vector<16x8x8xf32> to vector<16x8xf32>
    %15 = vector.shape_cast %14 : vector<16x8xf32> to vector<16x8x1xf32>
    %16 = vector.broadcast %15 : vector<16x8x1xf32> to vector<16x8x8xf32>
    %17 = arith.subf %13, %16 : vector<16x8x8xf32>
    %18 = math.exp %17 : vector<16x8x8xf32>
    %cst_1 = arith.constant dense<0.000000e+00> : vector<16x8xf32>
    %19 = vector.multi_reduction <add>, %18, %cst_1 [2] : vector<16x8x8xf32> to vector<16x8xf32>
    %20 = vector.shape_cast %8 : vector<16x8xf32> to vector<16x1x8xf32>
    %21 = vector.broadcast %20 : vector<16x1x8xf32> to vector<16x8x8xf32>
    %22 = arith.mulf %18, %21 : vector<16x8x8xf32>
    %cst_2 = arith.constant dense<0.000000e+00> : vector<16x8xf32>
    %23 = vector.multi_reduction <add>, %22, %cst_2 [2] : vector<16x8x8xf32> to vector<16x8xf32>
    %24 = arith.divf %23, %19 : vector<16x8xf32>
    %c0_3 = arith.constant 0 : index
    %c0_4 = arith.constant 0 : index
    %c0_5 = arith.constant 0 : index
    %25 = vector.load %arg1[%c0_3, %c0_4, %c0_5] : memref<2x8x24xf32, #tpu.memory_space<vmem>>, vector<1x8x24xf32>
    %26 = vector.shape_cast %25 : vector<1x8x24xf32> to vector<8x24xf32>
    %cst_6 = arith.constant dense<0.000000e+00> : vector<16x24xf32>
    %27 = tpu.matmul %24, %26, %cst_6 {dimension_numbers = #tpu.dot_dimension_numbers<[1], [0], [0], [1], [0, 0, 1, 1], [], []>} : vector<16x8xf32>, vector<8x24xf32>, vector<16x24xf32> -> vector<16x24xf32>
    %c0_7 = arith.constant 0 : index
    %c0_8 = arith.constant 0 : index
    %c0_9 = arith.constant 0 : index
    %28 = vector.load %arg2[%c0_7, %c0_8, %c0_9] : memref<2x1x24xf32, #tpu.memory_space<vmem>>, vector<1x1x24xf32>
    %29 = vector.shape_cast %28 : vector<1x1x24xf32> to vector<1x24xf32>
    %30 = vector.broadcast %29 : vector<1x24xf32> to vector<16x24xf32>
    %31 = arith.addf %27, %30 : vector<16x24xf32>
    %32 = vector.shape_cast %31 : vector<16x24xf32> to vector<2x8x24xf32>
    %33 = tpu.transpose %32, [0, 2, 1] : vector<2x8x24xf32> -> vector<2x24x8xf32>
    %34 = vector.extract_strided_slice %33 {offsets = [0, 0, 0], sizes = [2, 8, 8], strides = [1, 1, 1]} : vector<2x24x8xf32> to vector<2x8x8xf32>
    %35 = vector.shape_cast %34 : vector<2x8x8xf32> to vector<16x8xf32>
    %36 = vector.extract_strided_slice %33 {offsets = [0, 8, 0], sizes = [2, 8, 8], strides = [1, 1, 1]} : vector<2x24x8xf32> to vector<2x8x8xf32>
    %37 = vector.shape_cast %36 : vector<2x8x8xf32> to vector<16x8xf32>
    %38 = vector.extract_strided_slice %33 {offsets = [0, 16, 0], sizes = [2, 8, 8], strides = [1, 1, 1]} : vector<2x24x8xf32> to vector<2x8x8xf32>
    %39 = vector.shape_cast %38 : vector<2x8x8xf32> to vector<16x8xf32>
    %40 = vector.shape_cast %35 : vector<16x8xf32> to vector<16x8x1xf32>
    %41 = vector.shape_cast %37 : vector<16x8xf32> to vector<16x1x8xf32>
    %42 = vector.broadcast %40 : vector<16x8x1xf32> to vector<16x8x8xf32>
    %43 = vector.broadcast %41 : vector<16x1x8xf32> to vector<16x8x8xf32>
    %44 = arith.mulf %42, %43 : vector<16x8x8xf32>
    %cst_10 = arith.constant dense<0xFF800000> : vector<16x8xf32>
    %45 = vector.multi_reduction <maximumf>, %44, %cst_10 [2] : vector<16x8x8xf32> to vector<16x8xf32>
    %46 = vector.shape_cast %45 : vector<16x8xf32> to vector<16x8x1xf32>
    %47 = vector.broadcast %46 : vector<16x8x1xf32> to vector<16x8x8xf32>
    %48 = arith.subf %44, %47 : vector<16x8x8xf32>
    %49 = math.exp %48 : vector<16x8x8xf32>
    %cst_11 = arith.constant dense<0.000000e+00> : vector<16x8xf32>
    %50 = vector.multi_reduction <add>, %49, %cst_11 [2] : vector<16x8x8xf32> to vector<16x8xf32>
    %51 = vector.shape_cast %39 : vector<16x8xf32> to vector<16x1x8xf32>
    %52 = vector.broadcast %51 : vector<16x1x8xf32> to vector<16x8x8xf32>
    %53 = arith.mulf %49, %52 : vector<16x8x8xf32>
    %cst_12 = arith.constant dense<0.000000e+00> : vector<16x8xf32>
    %54 = vector.multi_reduction <add>, %53, %cst_12 [2] : vector<16x8x8xf32> to vector<16x8xf32>
    %55 = arith.divf %54, %50 : vector<16x8xf32>
    %c1 = arith.constant 1 : index
    %c0_13 = arith.constant 0 : index
    %c0_14 = arith.constant 0 : index
    %56 = vector.load %arg1[%c1, %c0_13, %c0_14] : memref<2x8x24xf32, #tpu.memory_space<vmem>>, vector<1x8x24xf32>
    %57 = vector.shape_cast %56 : vector<1x8x24xf32> to vector<8x24xf32>
    %cst_15 = arith.constant dense<0.000000e+00> : vector<16x24xf32>
    %58 = tpu.matmul %55, %57, %cst_15 {dimension_numbers = #tpu.dot_dimension_numbers<[1], [0], [0], [1], [0, 0, 1, 1], [], []>} : vector<16x8xf32>, vector<8x24xf32>, vector<16x24xf32> -> vector<16x24xf32>
    %c1_16 = arith.constant 1 : index
    %c0_17 = arith.constant 0 : index
    %c0_18 = arith.constant 0 : index
    %59 = vector.load %arg2[%c1_16, %c0_17, %c0_18] : memref<2x1x24xf32, #tpu.memory_space<vmem>>, vector<1x1x24xf32>
    %60 = vector.shape_cast %59 : vector<1x1x24xf32> to vector<1x24xf32>
    %61 = vector.broadcast %60 : vector<1x24xf32> to vector<16x24xf32>
    %62 = arith.addf %58, %61 : vector<16x24xf32>
    %63 = vector.extract_strided_slice %62 {offsets = [0, 0], sizes = [16, 8], strides = [1, 1]} : vector<16x24xf32> to vector<16x8xf32>
    %64 = vector.shape_cast %63 : vector<16x8xf32> to vector<2x8x8xf32>
    %c0_19 = arith.constant 0 : index
    %c0_20 = arith.constant 0 : index
    %c0_21 = arith.constant 0 : index
    %65 = vector.load %arg3[%c0_19, %c0_20, %c0_21] : memref<2x8x8xf32, #tpu.memory_space<vmem>>, vector<2x8x8xf32>
    tpu.vector_store %arg3[%c0_19, %c0_20, %c0_21], %64 {strides = array<i32>} : memref<2x8x8xf32, #tpu.memory_space<vmem>>, vector<2x8x8xf32>,
    return
  }
}

</mosaic_0001>

<bundles_post_ra>
// kernel: encoder_forward.1
= control target key start
LH: loop header
LB: loop body
LE: loop exit
PB: predicated region body
PF: predicated region fallthrough
CT: control target
= control target key end

     0   :  { %s2832_s0 = inlined_call_operand.vmem [shape: f32[16,24], index: 0, kind: input, shape index: {}]   ;;  %s2833_s1 = inlined_call_operand.vmem [shape: f32[2,8,24], index: 1, kind: input, shape index: {}]   ;;  %s2834_s2 = inlined_call_operand.vmem [shape: f32[2,1,24], index: 2, kind: input, shape index: {}]   ;;  %s2835_s3 = inlined_call_operand.hbm [shape: f32[2,8,8], index: 3, kind: output, shape index: {}]  }
   0x1   :  { %v15_v0 = vld [vmem:[%s2832_s0] sm:$0xff] }
   0x2   :  { %17 = vxpose.xlu0.b32.start.end [1/1] (short) (narrow) %v15_v0, 24 }
   0x3   :  { %8 = vsyncpa [#allocation3], 0  ;;  %v16_v1 = vld [vmem:[%s2832_s0 + $0x8] sm:$0xff]  ;;  %v81_v2 = vlaneseq  ;;  %v2174_v32 = vmov 1966171168   ;;  %vm389_vm0 = vcmask 64512  }
   0x4   :  { %v197_v33 = vunpack.c.l.s4 %v2174_v32  ;;  %vm900_vm1 = vcmask 1041409   ;;  %vm902_vm2 = vcmask 1042434   ;;  %vm904_vm3 = vcmask 1043459   ;;  %s2175_s22 = smov [#allocation2]  }
   0x5   :  { %v2205_v3 = vshrl.u32 %v81_v2, 7  ;;  %vm906_vm4 = vcmask 1044484   ;;  %vm908_vm5 = vcmask 1045509   ;;  %vm910_vm6 = vcmask 1046534   ;;  %s1982_s23 = sshll.u32 %s2175_s22, 4  ;;  %s1983_s23 = int_to_ptr.vmem [resolvable:$true] %s1982_s23 }
   0x6   :  { %v198_v34 = vunpack.c.0.s8 %v197_v33  ;;  %vm912_vm7 = vcmask 1047559   ;;  %s2150_s24 = scalar_lea.vmem %s1983_s23, 256  ;;  %p2155_p1 = scmp.lt.s32.totalorder %s1983_s23, %s1983_s23 }
   0x7   :  { %v2208_v4 = vsub.s32 0, %v2205_v3  ;;  %v2212_v7 = vsub.s32 1, %v2205_v3  ;;  %v2218_v10 = vsub.s32 2, %v2205_v3  ;;  %v2226_v16 = vsub.s32 3, %v2205_v3  ;;  %p2151_p0 = scmp.ne.s32.totalorder %s1983_s23, %s2150_s24  ;;  %p2156_p2 = scmp.lt.s32.totalorder %s2150_s24, %s2150_s24 }
   0x8   :  { %v2231_v19 = vsub.s32 4, %v2205_v3  ;;  %v2236_v22 = vsub.s32 5, %v2205_v3  ;;  %v2241_v25 = vsub.s32 6, %v2205_v3  ;;  %v2246_v28 = vsub.s32 7, %v2205_v3 }
   0x9   :  { %v2252_v35 = vsub.s32 %v198_v34, %v2205_v3  ;;  %p2157_p3 = por %p2156_p2, %p2155_p1 }
   0xb   :  { %49 = vxpose.xlu0.b32.start.end [1/1] (short) (narrow) %v16_v1, 24  ;;  %p2158_p4 = pnand %p2157_p3, %p2151_p0 }
  0x82   :  { %v33_v5 = vpop.trf.xlu0 }
  0x83   :  { %v84_v6 = vrot.slane %v33_v5, %v2208_v4  ;;  %v91_v9 = vrot.slane %v33_v5, %v2212_v7  ;;  %v98_v12 = vrot.slane %v33_v5, %v2218_v10  ;;  %v105_v17 = vrot.slane %v33_v5, %v2226_v16 }
  0x84   :  { %v112_v20 = vrot.slane %v33_v5, %v2231_v19  ;;  %v119_v23 = vrot.slane %v33_v5, %v2236_v22  ;;  %v126_v26 = vrot.slane %v33_v5, %v2241_v25  ;;  %v133_v29 = vrot.slane %v33_v5, %v2246_v28 }
  0x85   :  { %86 = vbcast.lane.b32.xlu1 %v84_v6, 256 }
  0x86   :  { %v2214_v8 = vpop.trf.xlu0 }
  0x87   :  { %v202_v36 = vrot.slane %v2214_v8, %v2252_v35  ;;  %v195_v60 = vcombine.high %v2214_v8, %v2214_v8 }
  0x89   :  { %93 = vbcast.lane.b32.xlu1 %v91_v9, 256  ;;  %v210_v38 = vcombine.high %v202_v36, %v202_v36  ;;  %v218_v39 = vrot.slane %v202_v36, %v2252_v35  ;;  %v209_v9 = vrot.slane %v195_v60, %v2252_v35 }
  0x8a   :  { %v2220_v11 = vpop.trf.xlu0 }
  0x8b   :  { %v296_v41 = vrot.slane %v218_v39, %v2208_v4  ;;  %v232_v42 = vrot.slane %v210_v38, %v2252_v35  ;;  %v240_v48 = vcombine.high %v218_v39, %v218_v39 }
  0x8d   :  { %100 = vbcast.lane.b32.xlu1 %v98_v12, 256  ;;  %v300_v46 = vrot.slane %v232_v42, %v2208_v4  ;;  %v304_v54 = vrot.slane %v240_v48, %v2208_v4  ;;  %v242_v62 = vcombine.high %v232_v42, %v232_v42 }
  0x8e   :  { %v65_v13 = vpop.trf.xlu0 }
  0x8f   :  { %v147_v14 = vrot.slane %v65_v13, %v2212_v7  ;;  %v140_v15 = vrot.slane %v65_v13, %v2208_v4  ;;  %v154_v18 = vrot.slane %v65_v13, %v2218_v10  ;;  %v161_v21 = vrot.slane %v65_v13, %v2226_v16 }
  0x90   :  { %v168_v24 = vrot.slane %v65_v13, %v2231_v19  ;;  %v175_v27 = vrot.slane %v65_v13, %v2236_v22  ;;  %v182_v30 = vrot.slane %v65_v13, %v2241_v25  ;;  %v189_v31 = vrot.slane %v65_v13, %v2246_v28 }
  0x91   :  { %149 = vbcast.lane.b32.xlu0 %v147_v14, 256  ;;  %142 = vbcast.lane.b32.xlu1 %v140_v15, 256  ;;  %v308_v12 = vrot.slane %v242_v62, %v2208_v4 }
  0x92   :  { %v66_v37 = vpop.trf.xlu0 }
  0x93   :  { %v251_v40 = vrot.slane %v66_v37, %v2252_v35 }
  0x95   :  { %107 = vbcast.lane.b32.xlu1 %v105_v17, 256  ;;  %v259_v45 = vcombine.high %v251_v40, %v251_v40  ;;  %v267_v51 = vrot.slane %v251_v40, %v2252_v35 }
  0x96   :  { %v2269_v53 = vpop.trf.xlu0 }
  0x97   :  { %v281_v52 = vrot.slane %v259_v45, %v2252_v35  ;;  %v328_v58 = vrot.slane %v267_v51, %v2208_v4  ;;  %v289_v6 = vcombine.high %v267_v51, %v267_v51 }
  0x99   :  { %156 = vbcast.lane.b32.xlu1 %v154_v18, 256  ;;  %v332_v59 = vrot.slane %v281_v52, %v2208_v4  ;;  %v336_v17 = vrot.slane %v289_v6, %v2208_v4 }
  0x9d   :  { %114 = vbcast.lane.b32.xlu1 %v112_v20, 256  ;;  %v225_v20 = vrot.slane %v209_v9, %v2252_v35 }
  0xa1   :  { %163 = vbcast.lane.b32.xlu1 %v161_v21, 256 }
  0xa5   :  { %121 = vbcast.lane.b32.xlu1 %v119_v23, 256 }
  0xa9   :  { %170 = vbcast.lane.b32.xlu1 %v168_v24, 256  ;;  %v291_v24 = vcombine.high %v281_v52, %v281_v52 }
  0xab   :  { %v340_v33 = vrot.slane %v291_v24, %v2208_v4 }
  0xad   :  { %128 = vbcast.lane.b32.xlu1 %v126_v26, 256  ;;  %v211_v26 = vcombine.high %v209_v9, %v209_v9 }
  0xaf   :  { %v239_v38 = vrot.slane %v211_v26, %v2252_v35 }
  0xb1   :  { %177 = vbcast.lane.b32.xlu1 %v175_v27, 256  ;;  %v244_v27 = vcombine.high %v66_v37, %v66_v37  ;;  %v316_v40 = vrot.slane %v239_v38, %v2208_v4  ;;  %v243_v62 = vcombine.high %v239_v38, %v239_v38 }
  0xb3   :  { %v258_v34 = vrot.slane %v244_v27, %v2252_v35  ;;  %v324_v6 = vrot.slane %v243_v62, %v2208_v4 }
  0xb5   :  { %135 = vbcast.lane.b32.xlu1 %v133_v29, 256  ;;  %v312_v29 = vrot.slane %v225_v20, %v2208_v4  ;;  %v274_v42 = vrot.slane %v258_v34, %v2252_v35 }
  0xb9   :  { %184 = vbcast.lane.b32.xlu1 %v182_v30, 256 }
  0xbd   :  { %191 = vbcast.lane.b32.xlu1 %v189_v31, 256 }
  0xf7   :  { %v87_v43 = vpop.permute.xlu1 %86 }
  0xf8   :  { %v2260_v44 = vmul.f32 %v296_v41, %v87_v43 }
  0xfa   :  { %v390_v47 = vsel %vm389_vm0, %v2260_v44, -inf }
  0xfb   :  { %v94_v49 = vpop.permute.xlu1 %93  ;;  %391 = vmax.xlane.f32.xlu1 %v390_v47  ;;  %v344_v47 = vrot.slane %v274_v42, %v2208_v4 }
  0xfc   :  { %v2265_v50 = vmul.f32 %v300_v46, %v94_v49  ;;  %v260_v46 = vcombine.high %v258_v34, %v258_v34  ;;  %v241_v49 = vcombine.high %v225_v20, %v225_v20 }
  0xfe   :  { %v393_v55 = vsel %vm389_vm0, %v2265_v50, -inf }
  0xff   :  { %v101_v56 = vpop.permute.xlu1 %100  ;;  %394 = vmax.xlane.f32.xlu0 %v393_v55 }
 0x100   :  { %v2274_v57 = vmul.f32 %v304_v54, %v101_v56  ;;  %v320_v54 = vrot.slane %v241_v49, %v2208_v4  ;;  %v288_v56 = vrot.slane %v260_v46, %v2252_v35 }
 0x102   :  { %v396_v61 = vsel %vm389_vm0, %v2274_v57, -inf  ;;  %v348_v60 = vrot.slane %v288_v56, %v2208_v4 }
 0x103   :  { %397 = vmax.xlane.f32.xlu0 %v396_v61  ;;  %v143_v63 = vpop.permute.xlu1 %142  ;;  %v150_v0 = vpop.permute.xlu0 %149 }
 0x104   :  { %v2282_v1 = vmul.f32 %v328_v58, %v143_v63  ;;  %v2284_v5 = vmul.f32 %v332_v59, %v150_v0 }
 0x106   :  { %v414_v13 = vsel %vm389_vm0, %v2282_v1, -inf  ;;  %v417_v8 = vsel %vm389_vm0, %v2284_v5, -inf }
 0x107   :  { %v108_v14 = vpop.permute.xlu1 %107  ;;  %415 = vmax.xlane.f32.xlu1 %v414_v13  ;;  %418 = vmax.xlane.f32.xlu0 %v417_v8 }
 0x108   :  { %v2292_v15 = vmul.f32 %v308_v12, %v108_v14  ;;  %v290_v12 = vcombine.high %v274_v42, %v274_v42 }
 0x10a   :  { %v399_v18 = vsel %vm389_vm0, %v2292_v15, -inf  ;;  %v352_v14 = vrot.slane %v290_v12, %v2208_v4 }
 0x10b   :  { %v157_v21 = vpop.permute.xlu1 %156  ;;  %400 = vmax.xlane.f32.xlu1 %v399_v18  ;;  %v292_v18 = vcombine.high %v288_v56, %v288_v56 }
 0x10c   :  { %v2298_v23 = vmul.f32 %v336_v17, %v157_v21 }
 0x10d   :  { %v356_v24 = vrot.slane %v292_v18, %v2208_v4 }
 0x10e   :  { %v420_v30 = vsel %vm389_vm0, %v2298_v23, -inf }
 0x10f   :  { %v115_v31 = vpop.permute.xlu1 %114  ;;  %421 = vmax.xlane.f32.xlu0 %v420_v30 }
 0x110   :  { %v2303_v32 = vmul.f32 %v312_v29, %v115_v31 }
 0x112   :  { %v402_v36 = vsel %vm389_vm0, %v2303_v32, -inf }
 0x113   :  { %v164_v39 = vpop.permute.xlu1 %163  ;;  %403 = vmax.xlane.f32.xlu1 %v402_v36 }
 0x114   :  { %v2310_v37 = vmul.f32 %v340_v33, %v164_v39 }
 0x116   :  { %v423_v41 = vsel %vm389_vm0, %v2310_v37, -inf }
 0x117   :  { %v122_v43 = vpop.permute.xlu1 %121  ;;  %424 = vmax.xlane.f32.xlu0 %v423_v41 }
 0x118   :  { %v2316_v45 = vmul.f32 %v316_v40, %v122_v43 }
 0x11a   :  { %v405_v48 = vsel %vm389_vm0, %v2316_v45, -inf }
 0x11b   :  { %v171_v51 = vpop.permute.xlu1 %170  ;;  %406 = vmax.xlane.f32.xlu1 %v405_v48 }
 0x11c   :  { %v2321_v52 = vmul.f32 %v344_v47, %v171_v51 }
 0x11e   :  { %v426_v55 = vsel %vm389_vm0, %v2321_v52, -inf }
 0x11f   :  { %v129_v58 = vpop.permute.xlu1 %128  ;;  %427 = vmax.xlane.f32.xlu0 %v426_v55 }
 0x120   :  { %v2327_v59 = vmul.f32 %v320_v54, %v129_v58 }
 0x122   :  { %v408_v61 = vsel %vm389_vm0, %v2327_v59, -inf }
 0x123   :  { %v178_v63 = vpop.permute.xlu1 %177  ;;  %409 = vmax.xlane.f32.xlu1 %v408_v61 }
 0x124   :  { %v2332_v0 = vmul.f32 %v348_v60, %v178_v63 }
 0x126   :  { %v429_v9 = vsel %vm389_vm0, %v2332_v0, -inf }
 0x127   :  { %v136_v13 = vpop.permute.xlu1 %135  ;;  %430 = vmax.xlane.f32.xlu0 %v429_v9 }
 0x128   :  { %v2337_v8 = vmul.f32 %v324_v6, %v136_v13 }
 0x12a   :  { %v411_v17 = vsel %vm389_vm0, %v2337_v8, -inf }
 0x12b   :  { %v185_v20 = vpop.permute.xlu1 %184  ;;  %412 = vmax.xlane.f32.xlu1 %v411_v17 }
 0x12c   :  { %v2342_v21 = vmul.f32 %v352_v14, %v185_v20 }
 0x12e   :  { %v432_v26 = vsel %vm389_vm0, %v2342_v21, -inf }
 0x12f   :  { %v192_v27 = vpop.permute.xlu1 %191  ;;  %433 = vmax.xlane.f32.xlu0 %v432_v26 }
 0x130   :  { %v2347_v29 = vmul.f32 %v356_v24, %v192_v27 }
 0x132   :  { %v435_v30 = vsel %vm389_vm0, %v2347_v29, -inf }
 0x133   :  { %436 = vmax.xlane.f32.xlu1 %v435_v30 }
 0x188   :  { %v392_v31 = vpop.xlane.xlu1 %391 }
 0x189   :  { %v438_v33 = vsub.f32 %v2260_v44, %v392_v31 }
 0x18b   :  { %v454_v34 = vmul.f32 1.442695, %v438_v33 }
 0x18c   :  { %v395_v36 = vpop.xlane.xlu0 %394 }
 0x18d   :  { %2022 = vpow2.f32 %v454_v34  ;;  %v439_v38 = vsub.f32 %v2265_v50, %v395_v36 }
 0x18f   :  { %v456_v39 = vmul.f32 1.442695, %v439_v38 }
 0x190   :  { %v398_v40 = vpop.xlane.xlu0 %397 }
 0x191   :  { %2024 = vpow2.f32 %v456_v39  ;;  %v440_v41 = vsub.f32 %v2274_v57, %v398_v40 }
 0x193   :  { %v458_v42 = vmul.f32 1.442695, %v440_v41 }
 0x194   :  { %v416_v43 = vpop.xlane.xlu1 %415  ;;  %v419_v46 = vpop.xlane.xlu0 %418 }
 0x195   :  { %2026 = vpow2.f32 %v458_v42  ;;  %v446_v47 = vsub.f32 %v2282_v1, %v416_v43  ;;  %v447_v48 = vsub.f32 %v2284_v5, %v419_v46 }
 0x197   :  { %v2356_v49 = vpop.eup %2022  ;;  %v470_v44 = vmul.f32 1.442695, %v446_v47  ;;  %v472_v51 = vmul.f32 1.442695, %v447_v48 }
 0x198   :  { %v401_v54 = vpop.xlane.xlu1 %400  ;;  %v486_v50 = vsel %vm389_vm0, %v2356_v49, 0.0 }
 0x199   :  { %2028 = vpow2.f32 %v470_v44  ;;  %v441_v55 = vsub.f32 %v2292_v15, %v401_v54  ;;  %487 = vadd.xlane.f32.xlu0 %v486_v50 }
 0x19a   :  { %2030 = vpow2.f32 %v472_v51 }
 0x19b   :  { %v2361_v57 = vpop.eup %2024  ;;  %v460_v56 = vmul.f32 1.442695, %v441_v55 }
 0x19c   :  { %v422_v58 = vpop.xlane.xlu0 %421  ;;  %v489_v1 = vsel %vm389_vm0, %v2361_v57, 0.0 }
 0x19d   :  { %2032 = vpow2.f32 %v460_v56  ;;  %v448_v5 = vsub.f32 %v2298_v23, %v422_v58  ;;  %490 = vadd.xlane.f32.xlu1 %v489_v1 }
 0x19f   :  { %v2366_v60 = vpop.eup %2026  ;;  %v474_v61 = vmul.f32 1.442695, %v448_v5 }
 0x1a0   :  { %v404_v62 = vpop.xlane.xlu1 %403  ;;  %v492_v15 = vsel %vm389_vm0, %v2366_v60, 0.0 }
 0x1a1   :  { %2034 = vpow2.f32 %v474_v61  ;;  %v442_v63 = vsub.f32 %v2303_v32, %v404_v62  ;;  %493 = vadd.xlane.f32.xlu0 %v492_v15  ;;  %v543_v61 = vrot.slane %v2220_v11, %v2252_v35 }
 0x1a3   :  { %v2371_v6 = vpop.eup %2028  ;;  %v462_v9 = vmul.f32 1.442695, %v442_v63  ;;  %v551_v63 = vcombine.high %v543_v61, %v543_v61 }
 0x1a4   :  { %v2373_v12 = vpop.eup %2030  ;;  %v425_v13 = vpop.xlane.xlu0 %424  ;;  %v510_v23 = vsel %vm389_vm0, %v2371_v6, 0.0 }
 0x1a5   :  { %2036 = vpow2.f32 %v462_v9  ;;  %v449_v14 = vsub.f32 %v2310_v37, %v425_v13  ;;  %511 = vadd.xlane.f32.xlu1 %v510_v23  ;;  %v513_v17 = vsel %vm389_vm0, %v2373_v12, 0.0  ;;  %v559_v9 = vrot.slane %v543_v61, %v2252_v35 }
 0x1a6   :  { %514 = vadd.xlane.f32.xlu0 %v513_v17  ;;  %v592_v13 = vrot.slane %v2269_v53, %v2252_v35 }
 0x1a7   :  { %v2380_v18 = vpop.eup %2032  ;;  %v476_v32 = vmul.f32 1.442695, %v449_v14  ;;  %v637_v17 = vrot.slane %v559_v9, %v2208_v4 }
 0x1a8   :  { %v407_v20 = vpop.xlane.xlu1 %406  ;;  %v495_v24 = vsel %vm389_vm0, %v2380_v18, 0.0  ;;  %v600_v14 = vcombine.high %v592_v13, %v592_v13 }
 0x1a9   :  { %2038 = vpow2.f32 %v476_v32  ;;  %v443_v26 = vsub.f32 %v2316_v45, %v407_v20  ;;  %496 = vadd.xlane.f32.xlu1 %v495_v24  ;;  %v573_v32 = vrot.slane %v551_v63, %v2252_v35  ;;  %v581_v20 = vcombine.high %v559_v9, %v559_v9 }
 0x1ab   :  { %v2385_v27 = vpop.eup %2034  ;;  %v464_v30 = vmul.f32 1.442695, %v443_v26 }
 0x1ac   :  { %v428_v37 = vpop.xlane.xlu0 %427  ;;  %v516_v31 = vsel %vm389_vm0, %v2385_v27, 0.0 }
 0x1ad   :  { %2040 = vpow2.f32 %v464_v30  ;;  %v450_v33 = vsub.f32 %v2321_v52, %v428_v37  ;;  %517 = vadd.xlane.f32.xlu0 %v516_v31  ;;  %v714_v30 = vmul.f32 %v2356_v49, %v637_v17  ;;  %v536_v37 = vcombine.high %v2220_v11, %v2220_v11 }
 0x1ae   :  { %v608_v31 = vrot.slane %v592_v13, %v2252_v35 }
 0x1af   :  { %v2390_v34 = vpop.eup %2036  ;;  %v478_v36 = vmul.f32 1.442695, %v450_v33  ;;  %v641_v33 = vrot.slane %v573_v32, %v2208_v4 }
 0x1b0   :  { %v410_v38 = vpop.xlane.xlu1 %409  ;;  %v498_v39 = vsel %vm389_vm0, %v2390_v34, 0.0 }
 0x1b1   :  { %2042 = vpow2.f32 %v478_v36  ;;  %v444_v45 = vsub.f32 %v2327_v59, %v410_v38  ;;  %499 = vadd.xlane.f32.xlu1 %v498_v39  ;;  %v645_v36 = vrot.slane %v581_v20, %v2208_v4  ;;  %v622_v38 = vrot.slane %v600_v14, %v2252_v35 }
 0x1b2   :  { %v715_v49 = vmul.f32 %v2361_v57, %v641_v33 }
 0x1b3   :  { %v2395_v40 = vpop.eup %2038  ;;  %v466_v41 = vmul.f32 1.442695, %v444_v45  ;;  %v716_v11 = vmul.f32 %v2366_v60, %v645_v36 }
 0x1b4   :  { %v431_v42 = vpop.xlane.xlu0 %430  ;;  %v519_v43 = vsel %vm389_vm0, %v2395_v40, 0.0 }
 0x1b5   :  { %2044 = vpow2.f32 %v466_v41  ;;  %v451_v52 = vsub.f32 %v2332_v0, %v431_v42  ;;  %520 = vadd.xlane.f32.xlu0 %v519_v43  ;;  %v730_v41 = vsel %vm389_vm0, %v714_v30, 0.0  ;;  %v550_v42 = vrot.slane %v536_v37, %v2252_v35 }
 0x1b6   :  { %v583_v43 = vcombine.high %v573_v32, %v573_v32 }
 0x1b7   :  { %v2400_v46 = vpop.eup %2040  ;;  %v480_v47 = vmul.f32 1.442695, %v451_v52  ;;  %v585_v52 = vcombine.high %v2269_v53, %v2269_v53 }
 0x1b8   :  { %v413_v48 = vpop.xlane.xlu1 %412  ;;  %v501_v44 = vsel %vm389_vm0, %v2400_v46, 0.0 }
 0x1b9   :  { %2046 = vpow2.f32 %v480_v47  ;;  %v445_v59 = vsub.f32 %v2337_v8, %v413_v48  ;;  %502 = vadd.xlane.f32.xlu1 %v501_v44  ;;  %v669_v47 = vrot.slane %v608_v31, %v2208_v4  ;;  %v673_v48 = vrot.slane %v622_v38, %v2208_v4 }
 0x1ba   :  { %v630_v44 = vcombine.high %v608_v31, %v608_v31  ;;  %v599_v53 = vrot.slane %v585_v52, %v2252_v35 }
 0x1bb   :  { %v2405_v51 = vpop.eup %2042  ;;  %v468_v54 = vmul.f32 1.442695, %v445_v59  ;;  %v733_v59 = vsel %vm389_vm0, %v715_v49, 0.0  ;;  %v722_v57 = vmul.f32 %v2371_v6, %v669_v47  ;;  %v723_v60 = vmul.f32 %v2373_v12, %v673_v48 }
 0x1bc   :  { %v434_v50 = vpop.xlane.xlu0 %433  ;;  %v522_v55 = vsel %vm389_vm0, %v2405_v51, 0.0  ;;  %v615_v9 = vrot.slane %v599_v53, %v2252_v35 }
 0x1bd   :  { %2048 = vpow2.f32 %v468_v54  ;;  %v452_v0 = vsub.f32 %v2342_v21, %v434_v50  ;;  %523 = vadd.xlane.f32.xlu0 %v522_v55  ;;  %v736_v54 = vsel %vm389_vm0, %v716_v11, 0.0  ;;  %v552_v50 = vcombine.high %v550_v42, %v550_v42 }
 0x1be   :  { %v566_v55 = vrot.slane %v550_v42, %v2252_v35  ;;  %v685_v17 = vrot.slane %v615_v9, %v2208_v4  ;;  %v631_v36 = vcombine.high %v615_v9, %v615_v9 }
 0x1bf   :  { %v2410_v56 = vpop.eup %2044  ;;  %v482_v58 = vmul.f32 1.442695, %v452_v0  ;;  %v649_v0 = vrot.slane %v583_v43, %v2208_v4  ;;  %v580_v63 = vrot.slane %v552_v50, %v2252_v35 }
 0x1c0   :  { %v437_v1 = vpop.xlane.xlu1 %436  ;;  %v504_v5 = vsel %vm389_vm0, %v2410_v56, 0.0  ;;  %v653_v61 = vrot.slane %v566_v55, %v2208_v4  ;;  %v582_v32 = vcombine.high %v566_v55, %v566_v55  ;;  %v726_v31 = vmul.f32 %v2405_v51, %v685_v17 }
 0x1c1   :  { %2050 = vpow2.f32 %v482_v58  ;;  %v453_v8 = vsub.f32 %v2347_v29, %v437_v1  ;;  %505 = vadd.xlane.f32.xlu1 %v504_v5  ;;  %v677_v58 = vrot.slane %v630_v44, %v2208_v4  ;;  %v632_v1 = vcombine.high %v622_v38, %v622_v38 }
 0x1c2   :  { %v754_v5 = vsel %vm389_vm0, %v722_v57, 0.0  ;;  %v717_v6 = vmul.f32 %v2380_v18, %v649_v0  ;;  %v718_v14 = vmul.f32 %v2390_v34, %v653_v61  ;;  %v661_v34 = vrot.slane %v582_v32, %v2208_v4 }
 0x1c3   :  { %v2417_v62 = vpop.eup %2046  ;;  %v484_v15 = vmul.f32 1.442695, %v453_v8  ;;  %v757_v8 = vsel %vm389_vm0, %v723_v60, 0.0  ;;  %v724_v12 = vmul.f32 %v2385_v27, %v677_v58  ;;  %v657_v27 = vrot.slane %v580_v63, %v2208_v4 }
 0x1c4   :  { %v525_v21 = vsel %vm389_vm0, %v2417_v62, 0.0  ;;  %v739_v13 = vsel %vm389_vm0, %v717_v6, 0.0  ;;  %v584_v33 = vcombine.high %v580_v63, %v580_v63  ;;  %v693_v51 = vrot.slane %v631_v36, %v2208_v4 }
 0x1c5   :  { %2052 = vpow2.f32 %v484_v15  ;;  %526 = vadd.xlane.f32.xlu0 %v525_v21  ;;  %v601_v15 = vcombine.high %v599_v53, %v599_v53  ;;  %v681_v21 = vrot.slane %v632_v1, %v2208_v4  ;;  %v719_v37 = vmul.f32 %v2400_v46, %v657_v27 }
 0x1c6   :  { %v665_v46 = vrot.slane %v584_v33, %v2208_v4  ;;  %v835_v17 = vand.u32 127, %v81_v2 }
 0x1c7   :  { %v2424_v23 = vpop.eup %2048  ;;  %v725_v18 = vmul.f32 %v2395_v40, %v681_v21  ;;  %v629_v20 = vrot.slane %v601_v15, %v2252_v35  ;;  %v745_v38 = vsel %vm389_vm0, %v719_v37, 0.0 }
 0x1c8   :  { %v507_v29 = vsel %vm389_vm0, %v2424_v23, 0.0  ;;  %v721_v52 = vmul.f32 %v2424_v23, %v665_v46  ;;  %v810_v23 = vld [vmem:[%s2833_s1] sm:$0xff] }
 0x1c9   :  { %508 = vadd.xlane.f32.xlu1 %v507_v29  ;;  %v760_v29 = vsel %vm389_vm0, %v724_v12, 0.0  ;;  %v763_v30 = vsel %vm389_vm0, %v725_v18, 0.0  ;;  %v689_v40 = vrot.slane %v629_v20, %v2208_v4  ;;  %v633_v11 = vcombine.high %v629_v20, %v629_v20  ;;  %2007 = vmatprep.subr.mxu0 %v810_v23 }
 0x1ca   :  { %2008 = vmatpush3.msra.mxu0 %v810_v23 }
 0x1cb   :  { %v2430_v24 = vpop.eup %2050  ;;  %v727_v49 = vmul.f32 %v2417_v62, %v689_v40  ;;  %v751_v62 = vsel %vm389_vm0, %v721_v52, 0.0  ;;  %v2502_v40 = vsub.s32 %v835_v17, %v2205_v3 }
 0x1cc   :  { %v528_v26 = vsel %vm389_vm0, %v2430_v24, 0.0  ;;  %v728_v47 = vmul.f32 %v2430_v24, %v693_v51 }
 0x1cd   :  { %529 = vadd.xlane.f32.xlu0 %v528_v26  ;;  %v742_v26 = vsel %vm389_vm0, %v718_v14, 0.0  ;;  %v769_v43 = vsel %vm389_vm0, %v727_v49, 0.0 }
 0x1ce   :  { %v772_v48 = vsel %vm389_vm0, %v728_v47, 0.0 }
 0x1cf   :  { %v2441_v39 = vpop.eup %2052 }
 0x1d0   :  { %v531_v45 = vsel %vm389_vm0, %v2441_v39, 0.0 }
 0x1d1   :  { %532 = vadd.xlane.f32.xlu1 %v531_v45  ;;  %731 = vadd.xlane.f32.xlu0 %v730_v41  ;;  %v766_v45 = vsel %vm389_vm0, %v726_v31, 0.0  ;;  %v720_v41 = vmul.f32 %v2410_v56, %v661_v34  ;;  %v697_v56 = vrot.slane %v633_v11, %v2208_v4 }
 0x1d3   :  { %v748_v42 = vsel %vm389_vm0, %v720_v41, 0.0  ;;  %v729_v44 = vmul.f32 %v2441_v39, %v697_v56 }
 0x1d5   :  { %734 = vadd.xlane.f32.xlu1 %v733_v59  ;;  %737 = vadd.xlane.f32.xlu0 %v736_v54  ;;  %v775_v59 = vsel %vm389_vm0, %v729_v44, 0.0 }
 0x1d9   :  { %755 = vadd.xlane.f32.xlu1 %v754_v5  ;;  %758 = vadd.xlane.f32.xlu0 %v757_v8 }
 0x1dd   :  { %740 = vadd.xlane.f32.xlu1 %v739_v13  ;;  %761 = vadd.xlane.f32.xlu0 %v760_v29 }
 0x1e1   :  { %743 = vadd.xlane.f32.xlu1 %v742_v26  ;;  %764 = vadd.xlane.f32.xlu0 %v763_v30 }
 0x1e5   :  { %746 = vadd.xlane.f32.xlu1 %v745_v38  ;;  %767 = vadd.xlane.f32.xlu0 %v766_v45 }
 0x1e9   :  { %749 = vadd.xlane.f32.xlu1 %v748_v42  ;;  %770 = vadd.xlane.f32.xlu0 %v769_v43 }
 0x1ed   :  { %752 = vadd.xlane.f32.xlu1 %v751_v62  ;;  %773 = vadd.xlane.f32.xlu0 %v772_v48 }
 0x1f1   :  { %776 = vadd.xlane.f32.xlu1 %v775_v59 }
 0x226   :  { %v488_v24 = vpop.xlane.xlu0 %487 }
 0x227   :  { %2054 = vrcp.f32 %v488_v24 }
 0x22a   :  { %v491_v54 = vpop.xlane.xlu1 %490 }
 0x22b   :  { %2056 = vrcp.f32 %v491_v54 }
 0x22e   :  { %v494_v57 = vpop.xlane.xlu0 %493 }
 0x22f   :  { %2058 = vrcp.f32 %v494_v57 }
 0x231   :  { %v2055_v18 = vpop.eup %2054 }
 0x232   :  { %v512_v60 = vpop.xlane.xlu1 %511 }
 0x233   :  { %v515_v50 = vpop.xlane.xlu0 %514  ;;  %2060 = vrcp.f32 %v512_v60 }
 0x234   :  { %2062 = vrcp.f32 %v515_v50 }
 0x235   :  { %v2057_v27 = vpop.eup %2056 }
 0x236   :  { %v497_v55 = vpop.xlane.xlu1 %496 }
 0x237   :  { %2064 = vrcp.f32 %v497_v55 }
 0x239   :  { %v2059_v32 = vpop.eup %2058 }
 0x23a   :  { %v518_v53 = vpop.xlane.xlu0 %517 }
 0x23b   :  { %2066 = vrcp.f32 %v518_v53 }
 0x23d   :  { %v2061_v30 = vpop.eup %2060 }
 0x23e   :  { %v500_v0 = vpop.xlane.xlu1 %499  ;;  %v2063_v31 = vpop.eup %2062 }
 0x23f   :  { %2068 = vrcp.f32 %v500_v0 }
 0x241   :  { %v2065_v34 = vpop.eup %2064 }
 0x242   :  { %v521_v39 = vpop.xlane.xlu0 %520 }
 0x245   :  { %v2067_v36 = vpop.eup %2066 }
 0x246   :  { %v503_v58 = vpop.xlane.xlu1 %502 }
 0x247   :  { %2070 = vrcp.f32 %v503_v58 }
 0x248   :  { %2072 = vrcp.f32 %v521_v39 }
 0x249   :  { %v2069_v49 = vpop.eup %2068 }
 0x24a   :  { %v524_v1 = vpop.xlane.xlu0 %523 }
 0x24e   :  { %v506_v5 = vpop.xlane.xlu1 %505 }
 0x24f   :  { %2074 = vrcp.f32 %v506_v5 }
 0x250   :  { %2076 = vrcp.f32 %v524_v1 }
 0x251   :  { %v2071_v51 = vpop.eup %2070 }
 0x252   :  { %v527_v8 = vpop.xlane.xlu0 %526  ;;  %v2073_v42 = vpop.eup %2072 }
 0x253   :  { %2078 = vrcp.f32 %v527_v8 }
 0x256   :  { %v509_v6 = vpop.xlane.xlu1 %508 }
 0x257   :  { %2080 = vrcp.f32 %v509_v6 }
 0x259   :  { %v2075_v56 = vpop.eup %2074 }
 0x25a   :  { %v530_v12 = vpop.xlane.xlu0 %529  ;;  %v2077_v23 = vpop.eup %2076 }
 0x25b   :  { %2082 = vrcp.f32 %v530_v12 }
 0x25d   :  { %v2079_v50 = vpop.eup %2078 }
 0x25e   :  { %v533_v61 = vpop.xlane.xlu1 %532  ;;  %v732_v15 = vpop.xlane.xlu0 %731 }
 0x25f   :  { %v779_v33 = vmul.f32 %v2055_v18, %v732_v15  ;;  %2084 = vrcp.f32 %v533_v61 }
 0x261   :  { %v839_v43 = vrot.slane %v779_v33, %v2502_v40  ;;  %v2081_v0 = vpop.eup %2080 }
 0x262   :  { %v735_v21 = vpop.xlane.xlu1 %734  ;;  %v738_v63 = vpop.xlane.xlu0 %737 }
 0x263   :  { %v781_v37 = vmul.f32 %v2057_v27, %v735_v21  ;;  %v783_v38 = vmul.f32 %v2059_v32, %v738_v63 }
 0x265   :  { %v843_v2 = vrot.slane %v781_v37, %v2502_v40  ;;  %v847_v62 = vrot.slane %v783_v38, %v2502_v40  ;;  %v2083_v8 = vpop.eup %2082 }
 0x266   :  { %v756_v9 = vpop.xlane.xlu1 %755  ;;  %v759_v13 = vpop.xlane.xlu0 %758 }
 0x267   :  { %v795_v52 = vmul.f32 %v2061_v30, %v756_v9  ;;  %v797_v47 = vmul.f32 %v2063_v31, %v759_v13  ;;  %v901_v24 = vsel %vm900_vm1, %v843_v2, %v839_v43 }
 0x268   :  { %v903_v6 = vsel %vm902_vm2, %v847_v62, %v901_v24 }
 0x269   :  { %v871_v39 = vrot.slane %v795_v52, %v2502_v40  ;;  %v875_v58 = vrot.slane %v797_v47, %v2502_v40 }
 0x26a   :  { %v741_v29 = vpop.xlane.xlu1 %740  ;;  %v762_v14 = vpop.xlane.xlu0 %761 }
 0x26b   :  { %v785_v46 = vmul.f32 %v2065_v34, %v741_v29  ;;  %v799_v48 = vmul.f32 %v2067_v36, %v762_v14  ;;  %v914_v27 = vsel %vm900_vm1, %v875_v58, %v871_v39 }
 0x26d   :  { %v851_v54 = vrot.slane %v785_v46, %v2502_v40  ;;  %v879_v12 = vrot.slane %v799_v48, %v2502_v40 }
 0x26e   :  { %v744_v20 = vpop.xlane.xlu1 %743  ;;  %v765_v26 = vpop.xlane.xlu0 %764 }
 0x26f   :  { %v787_v11 = vmul.f32 %v2069_v49, %v744_v20  ;;  %v801_v57 = vmul.f32 %v2073_v42, %v765_v26  ;;  %v905_v63 = vsel %vm904_vm3, %v851_v54, %v903_v6  ;;  %v2085_v26 = vpop.eup %2084  ;;  %v915_v30 = vsel %vm902_vm2, %v879_v12, %v914_v27 }
 0x271   :  { %v855_v55 = vrot.slane %v787_v11, %v2502_v40  ;;  %v883_v9 = vrot.slane %v801_v57, %v2502_v40 }
 0x272   :  { %v747_v45 = vpop.xlane.xlu1 %746  ;;  %v768_v41 = vpop.xlane.xlu0 %767 }
 0x273   :  { %v789_v3 = vmul.f32 %v2071_v51, %v747_v45  ;;  %v803_v53 = vmul.f32 %v2077_v23, %v768_v41  ;;  %v907_v14 = vsel %vm906_vm4, %v855_v55, %v905_v63  ;;  %v916_v33 = vsel %vm904_vm3, %v883_v9, %v915_v30  ;;  %v1993_v51 = vld [vmem:[%s2834_s2] ss:$0 sm:$0xff] }
 0x275   :  { %v859_v1 = vrot.slane %v789_v3, %v2502_v40  ;;  %v887_v18 = vrot.slane %v803_v53, %v2502_v40 }
 0x276   :  { %v750_v44 = vpop.xlane.xlu1 %749  ;;  %v771_v59 = vpop.xlane.xlu0 %770 }
 0x277   :  { %v791_v60 = vmul.f32 %v2075_v56, %v750_v44  ;;  %v805_v5 = vmul.f32 %v2079_v50, %v771_v59  ;;  %v909_v20 = vsel %vm908_vm5, %v859_v1, %v907_v14  ;;  %v917_v45 = vsel %vm906_vm4, %v887_v18, %v916_v33 }
 0x279   :  { %v863_v61 = vrot.slane %v791_v60, %v2502_v40  ;;  %v891_v17 = vrot.slane %v805_v5, %v2502_v40 }
 0x27a   :  { %v753_v15 = vpop.xlane.xlu1 %752  ;;  %v774_v21 = vpop.xlane.xlu0 %773 }
 0x27b   :  { %v793_v13 = vmul.f32 %v2081_v0, %v753_v15  ;;  %v807_v29 = vmul.f32 %v2083_v8, %v774_v21  ;;  %v911_v34 = vsel %vm910_vm6, %v863_v61, %v909_v20  ;;  %v918_v41 = vsel %vm908_vm5, %v891_v17, %v917_v45 }
 0x27d   :  { %v867_v32 = vrot.slane %v793_v13, %v2502_v40  ;;  %v895_v37 = vrot.slane %v807_v29, %v2502_v40 }
 0x27e   :  { %v777_v31 = vpop.xlane.xlu1 %776 }
 0x27f   :  { %v809_v36 = vmul.f32 %v2085_v26, %v777_v31  ;;  %v913_v38 = vsel %vm912_vm7, %v867_v32, %v911_v34  ;;  %v919_v2 = vsel %vm910_vm6, %v895_v37, %v918_v41 }
 0x280   :  { %2009 = vmatprep.mubr.msk.f32.mxu0 %vm389_vm0, %v913_v38 }
 0x281   :  { %v899_v49 = vrot.slane %v809_v36, %v2502_v40 }
 0x283   :  { %v920_v46 = vsel %vm912_vm7, %v899_v49, %v919_v2 }
 0x284   :  { %2010 = vmatmul.mubr.msk.f32.vlgmr.msra.gmra.mrb[0].mxu0 %vm389_vm0, %v920_v46 }
 0x357   :  { %v2011_v11 = vpop.f32.mrb[0].mxu0 }
 0x358   :  { %v997_v42 = vadd.f32 %v2011_v11, %v1993_v51  ;;  %v991_v43 = vpop.f32.mrb[1].mxu0 }
 0x359   :  { %v992_v52 = vadd.f32 %v1993_v51, %v991_v43 }
 0x35a   :  { %1032 = vxpose.xlu1.b32.start.end [1/1] (short) (narrow) %v997_v42, 24 }
 0x35b   :  { %1000 = vxpose.xlu0.b32.start.end [1/1] (short) (narrow) %v992_v52, 24 }
 0x3da   :  { %v1048_v47 = vpop.trf.xlu1 }
 0x3db   :  { %v1130_v3 = vrot.slane %v1048_v47, %v2212_v7  ;;  %v1123_v56 = vrot.slane %v1048_v47, %v2208_v4  ;;  %v1016_v62 = vpop.trf.xlu0  ;;  %v1137_v44 = vrot.slane %v1048_v47, %v2218_v10  ;;  %v1144_v59 = vrot.slane %v1048_v47, %v2226_v16 }
 0x3dc   :  { %v1067_v48 = vrot.slane %v1016_v62, %v2208_v4  ;;  %v1088_v23 = vrot.slane %v1016_v62, %v2226_v16  ;;  %v1151_v24 = vrot.slane %v1048_v47, %v2231_v19  ;;  %v1095_v54 = vrot.slane %v1016_v62, %v2231_v19 }
 0x3dd   :  { %1132 = vbcast.lane.b32.xlu1 %v1130_v3, 256  ;;  %1125 = vbcast.lane.b32.xlu0 %v1123_v56, 256  ;;  %v1074_v57 = vrot.slane %v1016_v62, %v2212_v7  ;;  %v1102_v60 = vrot.slane %v1016_v62, %v2236_v22  ;;  %v1081_v50 = vrot.slane %v1016_v62, %v2218_v10 }
 0x3de   :  { %v1109_v55 = vrot.slane %v1016_v62, %v2241_v25  ;;  %v1158_v16 = vrot.slane %v1048_v47, %v2236_v22  ;;  %v1116_v53 = vrot.slane %v1016_v62, %v2246_v28  ;;  %v1165_v19 = vrot.slane %v1048_v47, %v2241_v25  ;;  %v1049_v0 = vpop.trf.xlu1 }
 0x3df   :  { %v1172_v7 = vrot.slane %v1048_v47, %v2246_v28  ;;  %v1234_v39 = vrot.slane %v1049_v0, %v2252_v35  ;;  %v1017_v10 = vpop.trf.xlu0  ;;  %v1227_v61 = vcombine.high %v1049_v0, %v1049_v0 }
 0x3e0   :  { %v1185_v1 = vrot.slane %v1017_v10, %v2252_v35  ;;  %v1178_v15 = vcombine.high %v1017_v10, %v1017_v10 }
 0x3e1   :  { %1139 = vbcast.lane.b32.xlu1 %v1137_v44, 256  ;;  %1069 = vbcast.lane.b32.xlu0 %v1067_v48, 256  ;;  %v1242_v58 = vcombine.high %v1234_v39, %v1234_v39  ;;  %v1250_v5 = vrot.slane %v1234_v39, %v2252_v35  ;;  %v1241_v27 = vrot.slane %v1227_v61, %v2252_v35 }
 0x3e2   :  { %v2559_v8 = vpop.trf.xlu1  ;;  %v1193_v25 = vcombine.high %v1185_v1, %v1185_v1  ;;  %v1201_v21 = vrot.slane %v1185_v1, %v2252_v35  ;;  %v1192_v17 = vrot.slane %v1178_v15, %v2252_v35 }
 0x3e3   :  { %v1264_v22 = vrot.slane %v1242_v58, %v2252_v35  ;;  %v2561_v6 = vpop.trf.xlu0  ;;  %v1311_v12 = vrot.slane %v1250_v5, %v2208_v4  ;;  %v1272_v9 = vcombine.high %v1250_v5, %v1250_v5  ;;  %v1257_v41 = vrot.slane %v1241_v27, %v2252_v35 }
 0x3e4   :  { %v1215_v63 = vrot.slane %v1193_v25, %v2252_v35  ;;  %v1279_v32 = vrot.slane %v1201_v21, %v2208_v4  ;;  %v1194_v45 = vcombine.high %v1192_v17, %v1192_v17  ;;  %v1208_v49 = vrot.slane %v1192_v17, %v2252_v35 }
 0x3e5   :  { %1146 = vbcast.lane.b32.xlu1 %v1144_v59, 256  ;;  %1090 = vbcast.lane.b32.xlu0 %v1088_v23, 256  ;;  %v1315_v28 = vrot.slane %v1264_v22, %v2208_v4  ;;  %v1274_v20 = vcombine.high %v1264_v22, %v1264_v22  ;;  %v1319_v26 = vrot.slane %v1272_v9, %v2208_v4 }
 0x3e6   :  { %v1225_v31 = vcombine.high %v1215_v63, %v1215_v63  ;;  %v1222_v3 = vrot.slane %v1194_v45, %v2252_v35  ;;  %v1327_v56 = vrot.slane %v1257_v41, %v2208_v4  ;;  %v1295_v44 = vrot.slane %v1208_v49, %v2208_v4 }
 0x3e7   :  { %v1323_v2 = vrot.slane %v1274_v20, %v2208_v4  ;;  %v1273_v9 = vcombine.high %v1257_v41, %v1257_v41 }
 0x3e8   :  { %v1291_v11 = vrot.slane %v1225_v31, %v2208_v4 }
 0x3e9   :  { %1153 = vbcast.lane.b32.xlu1 %v1151_v24, 256  ;;  %1097 = vbcast.lane.b32.xlu0 %v1095_v54, 256 }
 0x3ed   :  { %1076 = vbcast.lane.b32.xlu1 %v1074_v57, 256  ;;  %1104 = vbcast.lane.b32.xlu0 %v1102_v60, 256  ;;  %v1243_v57 = vcombine.high %v1241_v27, %v1241_v27  ;;  %v1283_v60 = vrot.slane %v1215_v63, %v2208_v4 }
 0x3ef   :  { %v1271_v1 = vrot.slane %v1243_v57, %v2252_v35 }
 0x3f1   :  { %1083 = vbcast.lane.b32.xlu1 %v1081_v50, 256  ;;  %1111 = vbcast.lane.b32.xlu0 %v1109_v55, 256  ;;  %v1223_v50 = vcombine.high %v1201_v21, %v1201_v21  ;;  %v1331_v63 = vrot.slane %v1271_v1, %v2208_v4  ;;  %v1275_v17 = vcombine.high %v1271_v1, %v1271_v1 }
 0x3f3   :  { %v1287_v58 = vrot.slane %v1223_v50, %v2208_v4 }
 0x3f5   :  { %1160 = vbcast.lane.b32.xlu1 %v1158_v16, 256  ;;  %1118 = vbcast.lane.b32.xlu0 %v1116_v53, 256  ;;  %v1299_v53 = vrot.slane %v1222_v3, %v2208_v4 }
 0x3f9   :  { %1167 = vbcast.lane.b32.xlu1 %v1165_v19, 256  ;;  %1174 = vbcast.lane.b32.xlu0 %v1172_v7, 256  ;;  %v1224_v19 = vcombine.high %v1208_v49, %v1208_v49 }
 0x3fb   :  { %v1303_v25 = vrot.slane %v1224_v19, %v2208_v4 }
 0x44f   :  { %v1133_v13 = vpop.permute.xlu1 %1132  ;;  %v1126_v29 = vpop.permute.xlu0 %1125 }
 0x450   :  { %v2567_v14 = vmul.f32 %v1315_v28, %v1133_v13  ;;  %v2569_v18 = vmul.f32 %v1311_v12, %v1126_v29  ;;  %v1226_v28 = vcombine.high %v1222_v3, %v1222_v3 }
 0x452   :  { %v1399_v30 = vsel %vm389_vm0, %v2567_v14, -inf  ;;  %v1396_v37 = vsel %vm389_vm0, %v2569_v18, -inf  ;;  %v1307_v27 = vrot.slane %v1226_v28, %v2208_v4 }
 0x453   :  { %v1140_v34 = vpop.permute.xlu1 %1139  ;;  %1400 = vmax.xlane.f32.xlu0 %v1399_v30  ;;  %1397 = vmax.xlane.f32.xlu1 %v1396_v37  ;;  %v1070_v33 = vpop.permute.xlu0 %1069  ;;  %v1335_v37 = vrot.slane %v1273_v9, %v2208_v4 }
 0x454   :  { %v2579_v36 = vmul.f32 %v1319_v26, %v1140_v34  ;;  %v2581_v38 = vmul.f32 %v1279_v32, %v1070_v33  ;;  %v1339_v33 = vrot.slane %v1275_v17, %v2208_v4 }
 0x456   :  { %v1402_v46 = vsel %vm389_vm0, %v2579_v36, -inf  ;;  %v1372_v51 = vsel %vm389_vm0, %v2581_v38, -inf }
 0x457   :  { %v1147_v42 = vpop.permute.xlu1 %1146  ;;  %1403 = vmax.xlane.f32.xlu0 %v1402_v46  ;;  %1373 = vmax.xlane.f32.xlu1 %v1372_v51  ;;  %v1091_v43 = vpop.permute.xlu0 %1090 }
 0x458   :  { %v2591_v52 = vmul.f32 %v1323_v2, %v1147_v42  ;;  %v2593_v47 = vmul.f32 %v1291_v11, %v1091_v43 }
 0x45a   :  { %v1405_v62 = vsel %vm389_vm0, %v2591_v52, -inf  ;;  %v1381_v48 = vsel %vm389_vm0, %v2593_v47, -inf }
 0x45b   :  { %v1154_v59 = vpop.permute.xlu1 %1153  ;;  %1406 = vmax.xlane.f32.xlu0 %v1405_v62  ;;  %1382 = vmax.xlane.f32.xlu1 %v1381_v48  ;;  %v1098_v23 = vpop.permute.xlu0 %1097 }
 0x45c   :  { %v2602_v24 = vmul.f32 %v1327_v56, %v1154_v59  ;;  %v2604_v54 = vmul.f32 %v1295_v44, %v1098_v23 }
 0x45e   :  { %v1408_v55 = vsel %vm389_vm0, %v2602_v24, -inf  ;;  %v1384_v16 = vsel %vm389_vm0, %v2604_v54, -inf }
 0x45f   :  { %v1077_v7 = vpop.permute.xlu1 %1076  ;;  %1409 = vmax.xlane.f32.xlu0 %v1408_v55  ;;  %1385 = vmax.xlane.f32.xlu1 %v1384_v16  ;;  %v1105_v0 = vpop.permute.xlu0 %1104 }
 0x460   :  { %v2612_v39 = vmul.f32 %v1283_v60, %v1077_v7  ;;  %v2614_v10 = vmul.f32 %v1299_v53, %v1105_v0 }
 0x462   :  { %v1375_v5 = vsel %vm389_vm0, %v2612_v39, -inf  ;;  %v1387_v22 = vsel %vm389_vm0, %v2614_v10, -inf }
 0x463   :  { %v1084_v12 = vpop.permute.xlu1 %1083  ;;  %1376 = vmax.xlane.f32.xlu0 %v1375_v5  ;;  %1388 = vmax.xlane.f32.xlu1 %v1387_v22  ;;  %v1112_v61 = vpop.permute.xlu0 %1111 }
 0x464   :  { %v2623_v15 = vmul.f32 %v1287_v58, %v1084_v12  ;;  %v2625_v21 = vmul.f32 %v1303_v25, %v1112_v61 }
 0x466   :  { %v1378_v13 = vsel %vm389_vm0, %v2623_v15, -inf  ;;  %v1390_v29 = vsel %vm389_vm0, %v2625_v21, -inf }
 0x467   :  { %v1161_v32 = vpop.permute.xlu1 %1160  ;;  %1379 = vmax.xlane.f32.xlu0 %v1378_v13  ;;  %1391 = vmax.xlane.f32.xlu1 %v1390_v29  ;;  %v1119_v20 = vpop.permute.xlu0 %1118 }
 0x468   :  { %v1369_v26 = vmul.f32 %v1331_v63, %v1161_v32  ;;  %v2633_v30 = vmul.f32 %v1307_v27, %v1119_v20 }
 0x46a   :  { %v1411_v31 = vsel %vm389_vm0, %v1369_v26, -inf  ;;  %v1393_v34 = vsel %vm389_vm0, %v2633_v30, -inf }
 0x46b   :  { %v1168_v45 = vpop.permute.xlu1 %1167  ;;  %1412 = vmax.xlane.f32.xlu0 %v1411_v31  ;;  %1394 = vmax.xlane.f32.xlu1 %v1393_v34  ;;  %v1175_v41 = vpop.permute.xlu0 %1174 }
 0x46c   :  { %v1370_v49 = vmul.f32 %v1335_v37, %v1168_v45  ;;  %v1371_v2 = vmul.f32 %v1339_v33, %v1175_v41 }
 0x46e   :  { %v1414_v46 = vsel %vm389_vm0, %v1370_v49, -inf  ;;  %v1417_v51 = vsel %vm389_vm0, %v1371_v2, -inf }
 0x46f   :  { %1415 = vmax.xlane.f32.xlu0 %v1414_v46  ;;  %1418 = vmax.xlane.f32.xlu1 %v1417_v51 }
 0x4e0   :  { %v1398_v11 = vpop.xlane.xlu1 %1397  ;;  %v1401_v42 = vpop.xlane.xlu0 %1400 }
 0x4e1   :  { %v1428_v43 = vsub.f32 %v2569_v18, %v1398_v11  ;;  %v1429_v3 = vsub.f32 %v2567_v14, %v1401_v42 }
 0x4e3   :  { %v1452_v56 = vmul.f32 1.442695, %v1428_v43  ;;  %v1454_v62 = vmul.f32 1.442695, %v1429_v3 }
 0x4e4   :  { %v1374_v48 = vpop.xlane.xlu1 %1373  ;;  %v1404_v44 = vpop.xlane.xlu0 %1403 }
 0x4e5   :  { %2086 = vpow2.f32 %v1452_v56  ;;  %v1430_v59 = vsub.f32 %v2579_v36, %v1404_v44  ;;  %v1420_v27 = vsub.f32 %v2581_v38, %v1374_v48 }
 0x4e6   :  { %2088 = vpow2.f32 %v1454_v62 }
 0x4e7   :  { %v1456_v23 = vmul.f32 1.442695, %v1430_v59 }
 0x4e8   :  { %v1383_v57 = vpop.xlane.xlu1 %1382  ;;  %v1407_v60 = vpop.xlane.xlu0 %1406 }
 0x4e9   :  { %v1431_v50 = vsub.f32 %v2591_v52, %v1407_v60  ;;  %2090 = vpow2.f32 %v1456_v23 }
 0x4eb   :  { %v1458_v55 = vmul.f32 1.442695, %v1431_v50 }
 0x4ec   :  { %v1386_v16 = vpop.xlane.xlu1 %1385  ;;  %v1410_v53 = vpop.xlane.xlu0 %1409 }
 0x4ed   :  { %v1432_v18 = vsub.f32 %v2602_v24, %v1410_v53  ;;  %2092 = vpow2.f32 %v1458_v55  ;;  %v1424_v46 = vsub.f32 %v2604_v54, %v1386_v16  ;;  %v1567_v53 = vcombine.high %v2559_v8, %v2559_v8 }
 0x4ef   :  { %v2647_v14 = vpop.eup %2086  ;;  %v1460_v19 = vmul.f32 1.442695, %v1432_v18  ;;  %v1444_v51 = vmul.f32 1.442695, %v1424_v46 }
 0x4f0   :  { %v2649_v7 = vpop.eup %2088  ;;  %v1389_v0 = vpop.xlane.xlu1 %1388  ;;  %v1492_v58 = vsel %vm389_vm0, %v2647_v14, 0.0 }
 0x4f1   :  { %v1377_v36 = vpop.xlane.xlu0 %1376  ;;  %1493 = vadd.xlane.f32.xlu1 %v1492_v58  ;;  %v1495_v52 = vsel %vm389_vm0, %v2649_v7, 0.0  ;;  %2094 = vpow2.f32 %v1460_v19 }
 0x4f2   :  { %1496 = vadd.xlane.f32.xlu0 %v1495_v52  ;;  %v1421_v9 = vsub.f32 %v2612_v39, %v1377_v36  ;;  %v1436_v39 = vmul.f32 1.442695, %v1420_v27 }
 0x4f3   :  { %v2655_v1 = vpop.eup %2090 }
 0x4f4   :  { %v1392_v24 = vpop.xlane.xlu1 %1391  ;;  %v1498_v22 = vsel %vm389_vm0, %v2655_v1, 0.0  ;;  %v1438_v34 = vmul.f32 1.442695, %v1421_v9 }
 0x4f5   :  { %v1380_v5 = vpop.xlane.xlu0 %1379  ;;  %v1426_v3 = vsub.f32 %v2625_v21, %v1392_v24  ;;  %v1581_v24 = vrot.slane %v1567_v53, %v2252_v35 }
 0x4f6   :  { %1499 = vadd.xlane.f32.xlu0 %v1498_v22  ;;  %v1422_v41 = vsub.f32 %v2623_v15, %v1380_v5 }
 0x4f7   :  { %v2659_v25 = vpop.eup %2092 }
 0x4f8   :  { %v2661_v28 = vpop.xlane.xlu1 %1394  ;;  %v1501_v63 = vsel %vm389_vm0, %v2659_v25, 0.0 }
 0x4f9   :  { %v1413_v12 = vpop.xlane.xlu0 %1412  ;;  %v1427_v21 = vsub.f32 %v2633_v30, %v2661_v28 }
 0x4fa   :  { %v1433_v61 = vsub.f32 %v1369_v26, %v1413_v12  ;;  %1502 = vadd.xlane.f32.xlu0 %v1501_v63  ;;  %v1423_v26 = vsub.f32 %v2593_v47, %v1383_v57  ;;  %v1425_v47 = vsub.f32 %v2614_v10, %v1389_v0  ;;  %v1448_v57 = vmul.f32 1.442695, %v1426_v3 }
 0x4fb   :  { %v2666_v29 = vpop.eup %2094  ;;  %v1450_v19 = vmul.f32 1.442695, %v1427_v21  ;;  %v1597_v63 = vrot.slane %v1581_v24, %v2252_v35 }
 0x4fc   :  { %v1462_v13 = vmul.f32 1.442695, %v1433_v61  ;;  %v1419_v17 = vpop.xlane.xlu1 %1418  ;;  %v1504_v31 = vsel %vm389_vm0, %v2666_v29, 0.0  ;;  %v1442_v38 = vmul.f32 1.442695, %v1423_v26 }
 0x4fd   :  { %v1416_v32 = vpop.xlane.xlu0 %1415  ;;  %v1435_v20 = vsub.f32 %v1371_v2, %v1419_v17  ;;  %v1574_v2 = vrot.slane %v2559_v8, %v2252_v35  ;;  %v1446_v43 = vmul.f32 1.442695, %v1425_v47  ;;  %v1613_v21 = vcombine.high %v1597_v63, %v1597_v63 }
 0x4fe   :  { %v1434_v37 = vsub.f32 %v1370_v49, %v1416_v32  ;;  %2096 = vpow2.f32 %v1462_v13  ;;  %1505 = vadd.xlane.f32.xlu0 %v1504_v31  ;;  %v1440_v49 = vmul.f32 1.442695, %v1422_v41  ;;  %v1583_v41 = vcombine.high %v1581_v24, %v1581_v24 }
 0x4ff   :  { %v1466_v33 = vmul.f32 1.442695, %v1435_v20  ;;  %v1582_v54 = vcombine.high %v1574_v2, %v1574_v2  ;;  %v1590_v59 = vrot.slane %v1574_v2, %v2252_v35 }
 0x500   :  { %v1464_v45 = vmul.f32 1.442695, %v1434_v37  ;;  %v1667_v37 = vrot.slane %v1597_v63, %v2208_v4 }
 0x501   :  { %2098 = vpow2.f32 %v1466_v33  ;;  %v1604_v23 = vrot.slane %v1582_v54, %v2252_v35  ;;  %v1612_v18 = vcombine.high %v1590_v59, %v1590_v59 }
 0x502   :  { %2100 = vpow2.f32 %v1464_v45  ;;  %v1708_v33 = vmul.f32 %v2666_v29, %v1667_v37  ;;  %v1518_v45 = vcombine.high %v2561_v6, %v2561_v6 }
 0x503   :  { %2102 = vpow2.f32 %v1438_v34  ;;  %v1655_v0 = vrot.slane %v1604_v23, %v2208_v4  ;;  %v1659_v8 = vrot.slane %v1612_v18, %v2208_v4  ;;  %v1614_v5 = vcombine.high %v1604_v23, %v1604_v23 }
 0x504   :  { %2104 = vpow2.f32 %v1436_v39  ;;  %v1651_v39 = vrot.slane %v1590_v59, %v2208_v4  ;;  %v1748_v29 = vsel %vm389_vm0, %v1708_v33, 0.0 }
 0x505   :  { %2106 = vpow2.f32 %v1442_v38  ;;  %v1705_v52 = vmul.f32 %v2649_v7, %v1655_v0  ;;  %v1706_v61 = vmul.f32 %v2655_v1, %v1659_v8  ;;  %v1525_v7 = vrot.slane %v2561_v6, %v2252_v35 }
 0x506   :  { %2108 = vpow2.f32 %v1440_v49  ;;  %v1663_v9 = vrot.slane %v1614_v5, %v2208_v4  ;;  %v1704_v2 = vmul.f32 %v2647_v14, %v1651_v39  ;;  %v1532_v6 = vrot.slane %v1518_v45, %v2252_v35 }
 0x507   :  { %2110 = vpow2.f32 %v1444_v51  ;;  %v1739_v12 = vsel %vm389_vm0, %v1705_v52, 0.0  ;;  %v1742_v17 = vsel %vm389_vm0, %v1706_v61, 0.0  ;;  %v1533_v20 = vcombine.high %v1525_v7, %v1525_v7 }
 0x508   :  { %v2677_v11 = vpop.eup %2096  ;;  %2112 = vpow2.f32 %v1446_v43  ;;  %v1707_v32 = vmul.f32 %v2659_v25, %v1663_v9  ;;  %v1541_v1 = vrot.slane %v1525_v7, %v2252_v35  ;;  %v1611_v43 = vrot.slane %v1583_v41, %v2252_v35 }
 0x509   :  { %v1507_v15 = vsel %vm389_vm0, %v2677_v11, 0.0  ;;  %2114 = vpow2.f32 %v1448_v57  ;;  %v1555_v25 = vrot.slane %v1533_v20, %v2252_v35  ;;  %v1736_v3 = vsel %vm389_vm0, %v1704_v2, 0.0 }
 0x50a   :  { %1508 = vadd.xlane.f32.xlu0 %v1507_v15  ;;  %2116 = vpow2.f32 %v1450_v19  ;;  %v1745_v34 = vsel %vm389_vm0, %v1707_v32, 0.0  ;;  %v1563_v38 = vcombine.high %v1541_v1, %v1541_v1  ;;  %v1619_v46 = vrot.slane %v1541_v1, %v2208_v4 }
 0x50b   :  { %v2681_v42 = vpop.eup %2098  ;;  %v1623_v47 = vrot.slane %v1555_v25, %v2208_v4  ;;  %v1565_v15 = vcombine.high %v1555_v25, %v1555_v25  ;;  %v1534_v59 = vcombine.high %v1532_v6, %v1532_v6  ;;  %v1671_v57 = vrot.slane %v1611_v43, %v2208_v4 }
 0x50c   :  { %v2684_v56 = vpop.eup %2100  ;;  %v1513_v62 = vsel %vm389_vm0, %v2681_v42, 0.0  ;;  %v1627_v54 = vrot.slane %v1563_v38, %v2208_v4  ;;  %v1675_v19 = vrot.slane %v1613_v21, %v2208_v4  ;;  %v1615_v61 = vcombine.high %v1611_v43, %v1611_v43 }
 0x50d   :  { %v2688_v10 = vpop.eup %2102  ;;  %1514 = vadd.xlane.f32.xlu1 %v1513_v62  ;;  %v1510_v48 = vsel %vm389_vm0, %v2684_v56, 0.0  ;;  %v1631_v23 = vrot.slane %v1565_v15, %v2208_v4  ;;  %v1709_v53 = vmul.f32 %v2677_v11, %v1671_v57  ;;  %v1562_v18 = vrot.slane %v1534_v59, %v2252_v35 }
 0x50e   :  { %v2105_v44 = vpop.eup %2104  ;;  %1511 = vadd.xlane.f32.xlu0 %v1510_v48  ;;  %v1471_v60 = vsel %vm389_vm0, %v2688_v10, 0.0  ;;  %v1697_v62 = vmul.f32 %v2688_v10, %v1623_v47 }
 0x50f   :  { %v2698_v50 = vpop.eup %2106  ;;  %v1468_v55 = vsel %vm389_vm0, %v2105_v44, 0.0  ;;  %v1696_v51 = vmul.f32 %v2105_v44, %v1619_v46  ;;  %v1548_v44 = vrot.slane %v1532_v6, %v2252_v35  ;;  %v1639_v52 = vrot.slane %v1562_v18, %v2208_v4 }
 0x510   :  { %v2109_v16 = vpop.eup %2108  ;;  %v1477_v30 = vsel %vm389_vm0, %v2698_v50, 0.0 }
 0x511   :  { %1472 = vadd.xlane.f32.xlu1 %v1471_v60  ;;  %v2706_v36 = vpop.eup %2110  ;;  %v1474_v58 = vsel %vm389_vm0, %v2109_v16, 0.0  ;;  %v1712_v14 = vsel %vm389_vm0, %v1696_v51, 0.0  ;;  %v1698_v48 = vmul.f32 %v2109_v16, %v1627_v54  ;;  %v1715_v60 = vsel %vm389_vm0, %v1697_v62, 0.0 }
 0x512   :  { %1469 = vadd.xlane.f32.xlu0 %v1468_v55  ;;  %v1480_v22 = vsel %vm389_vm0, %v2706_v36, 0.0  ;;  %v2714_v28 = vpop.eup %2112  ;;  %v1699_v55 = vmul.f32 %v2698_v50, %v1631_v23  ;;  %v1635_v16 = vrot.slane %v1548_v44, %v2208_v4  ;;  %v1710_v50 = vmul.f32 %v2684_v56, %v1675_v19 }
 0x513   :  { %v1483_v13 = vsel %vm389_vm0, %v2714_v28, 0.0  ;;  %v2724_v27 = vpop.eup %2114  ;;  %v1718_v10 = vsel %vm389_vm0, %v1698_v48, 0.0  ;;  %v1564_v11 = vcombine.high %v1548_v44, %v1548_v44  ;;  %v1701_v8 = vmul.f32 %v2714_v28, %v1639_v52 }
 0x514   :  { %v1486_v31 = vsel %vm389_vm0, %v2724_v27, 0.0  ;;  %v2732_v26 = vpop.eup %2116  ;;  %v1721_v0 = vsel %vm389_vm0, %v1699_v55, 0.0  ;;  %v1754_v35 = vsel %vm389_vm0, %v1710_v50, 0.0  ;;  %v1679_v28 = vrot.slane %v1615_v61, %v2208_v4 }
 0x515   :  { %1478 = vadd.xlane.f32.xlu1 %v1477_v30  ;;  %v1489_v49 = vsel %vm389_vm0, %v2732_v26, 0.0  ;;  %v1700_v30 = vmul.f32 %v2706_v36, %v1635_v16  ;;  %v1643_v5 = vrot.slane %v1564_v11, %v2208_v4  ;;  %v1566_v36 = vcombine.high %v1562_v18, %v1562_v18 }
 0x516   :  { %1475 = vadd.xlane.f32.xlu0 %v1474_v58  ;;  %v1751_v58 = vsel %vm389_vm0, %v1709_v53, 0.0 }
 0x517   :  { %v1724_v24 = vsel %vm389_vm0, %v1700_v30, 0.0  ;;  %v1647_v56 = vrot.slane %v1566_v36, %v2208_v4 }
 0x519   :  { %1481 = vadd.xlane.f32.xlu1 %v1480_v22  ;;  %v1727_v22 = vsel %vm389_vm0, %v1701_v8, 0.0  ;;  %v1703_v63 = vmul.f32 %v2732_v26, %v1647_v56 }
 0x51a   :  { %1740 = vadd.xlane.f32.xlu0 %v1739_v12  ;;  %v1702_v12 = vmul.f32 %v2724_v27, %v1643_v5  ;;  %v1996_v27 = vld [vmem:[%s2833_s1 + $0x8] sm:$0xff] }
 0x51b   :  { %v1733_v9 = vsel %vm389_vm0, %v1703_v63, 0.0  ;;  %2012 = vmatprep.subr.mxu1 %v1996_v27 }
 0x51c   :  { %v1730_v7 = vsel %vm389_vm0, %v1702_v12, 0.0  ;;  %2013 = vmatpush3.msra.mxu1 %v1996_v27 }
 0x51d   :  { %1484 = vadd.xlane.f32.xlu1 %v1483_v13  ;;  %v1711_v13 = vmul.f32 %v2681_v42, %v1679_v28 }
 0x51e   :  { %1743 = vadd.xlane.f32.xlu0 %v1742_v17 }
 0x51f   :  { %v1757_v17 = vsel %vm389_vm0, %v1711_v13, 0.0 }
 0x521   :  { %1487 = vadd.xlane.f32.xlu1 %v1486_v31 }
 0x522   :  { %1746 = vadd.xlane.f32.xlu0 %v1745_v34 }
 0x525   :  { %1490 = vadd.xlane.f32.xlu1 %v1489_v49 }
 0x526   :  { %1749 = vadd.xlane.f32.xlu0 %v1748_v29 }
 0x529   :  { %1737 = vadd.xlane.f32.xlu1 %v1736_v3 }
 0x52a   :  { %1713 = vadd.xlane.f32.xlu0 %v1712_v14 }
 0x52d   :  { %1716 = vadd.xlane.f32.xlu1 %v1715_v60 }
 0x52e   :  { %1719 = vadd.xlane.f32.xlu0 %v1718_v10 }
 0x531   :  { %1722 = vadd.xlane.f32.xlu1 %v1721_v0 }
 0x532   :  { %1752 = vadd.xlane.f32.xlu0 %v1751_v58 }
 0x535   :  { %1725 = vadd.xlane.f32.xlu1 %v1724_v24 }
 0x536   :  { %1755 = vadd.xlane.f32.xlu0 %v1754_v35 }
 0x539   :  { %1728 = vadd.xlane.f32.xlu1 %v1727_v22 }
 0x53d   :  { %1731 = vadd.xlane.f32.xlu1 %v1730_v7 }
 0x541   :  { %1734 = vadd.xlane.f32.xlu1 %v1733_v9 }
 0x545   :  { %1758 = vadd.xlane.f32.xlu1 %v1757_v17 }
 0x57e   :  { %v1494_v31 = vpop.xlane.xlu1 %1493 }
 0x57f   :  { %v1497_v32 = vpop.xlane.xlu0 %1496  ;;  %2118 = vrcp.f32 %v1494_v31 }
 0x580   :  { %2120 = vrcp.f32 %v1497_v32 }
 0x583   :  { %v1500_v20 = vpop.xlane.xlu0 %1499 }
 0x587   :  { %v1503_v1 = vpop.xlane.xlu0 %1502 }
 0x589   :  { %v2119_v3 = vpop.eup %2118 }
 0x58a   :  { %v2121_v62 = vpop.eup %2120 }
 0x58b   :  { %v1506_v37 = vpop.xlane.xlu0 %1505 }
 0x597   :  { %v1509_v4 = vpop.xlane.xlu0 %1508 }
 0x59a   :  { %v1515_v26 = vpop.xlane.xlu1 %1514 }
 0x59b   :  { %v1512_v34 = vpop.xlane.xlu0 %1511 }
 0x59e   :  { %v1473_v33 = vpop.xlane.xlu1 %1472 }
 0x59f   :  { %v1470_v42 = vpop.xlane.xlu0 %1469  ;;  %2122 = vrcp.f32 %v1473_v33 }
 0x5a0   :  { %2124 = vrcp.f32 %v1500_v20 }
 0x5a1   :  { %2126 = vrcp.f32 %v1470_v42 }
 0x5a2   :  { %v1479_v45 = vpop.xlane.xlu1 %1478 }
 0x5a3   :  { %v1476_v25 = vpop.xlane.xlu0 %1475 }
 0x5a4   :  { %2128 = vrcp.f32 %v1476_v25 }
 0x5a5   :  { %2130 = vrcp.f32 %v1479_v45 }
 0x5a6   :  { %v1482_v39 = vpop.xlane.xlu1 %1481 }
 0x5a7   :  { %v1741_v41 = vpop.xlane.xlu0 %1740  ;;  %2132 = vrcp.f32 %v1482_v39 }
 0x5a8   :  { %v1779_v60 = vmul.f32 %v2121_v62, %v1741_v41 }
 0x5a9   :  { %v2123_v14 = vpop.eup %2122 }
 0x5aa   :  { %v1485_v38 = vpop.xlane.xlu1 %1484  ;;  %v2125_v59 = vpop.eup %2124  ;;  %v1857_v8 = vrot.slane %v1779_v60, %v2502_v40 }
 0x5ab   :  { %v1744_v46 = vpop.xlane.xlu0 %1743  ;;  %2134 = vrcp.f32 %v1485_v38  ;;  %v2127_v57 = vpop.eup %2126 }
 0x5ac   :  { %2136 = vrcp.f32 %v1503_v1  ;;  %v1781_v52 = vmul.f32 %v2125_v59, %v1744_v46 }
 0x5ae   :  { %v1488_v49 = vpop.xlane.xlu1 %1487  ;;  %v2129_v21 = vpop.eup %2128  ;;  %v1861_v27 = vrot.slane %v1781_v52, %v2502_v40 }
 0x5af   :  { %v1747_v2 = vpop.xlane.xlu0 %1746  ;;  %2138 = vrcp.f32 %v1488_v49  ;;  %v2131_v53 = vpop.eup %2130 }
 0x5b0   :  { %2140 = vrcp.f32 %v1506_v37 }
 0x5b1   :  { %2142 = vrcp.f32 %v1509_v4  ;;  %v2133_v19 = vpop.eup %2132 }
 0x5b2   :  { %v1491_v29 = vpop.xlane.xlu1 %1490  ;;  %2144 = vrcp.f32 %v1512_v34 }
 0x5b3   :  { %v1750_v51 = vpop.xlane.xlu0 %1749  ;;  %2146 = vrcp.f32 %v1491_v29 }
 0x5b4   :  { %2148 = vrcp.f32 %v1515_v26 }
 0x5b5   :  { %v2135_v50 = vpop.eup %2134 }
 0x5b6   :  { %v1738_v6 = vpop.xlane.xlu1 %1737  ;;  %v2137_v24 = vpop.eup %2136 }
 0x5b7   :  { %v1714_v47 = vpop.xlane.xlu0 %1713  ;;  %v1777_v44 = vmul.f32 %v2119_v3, %v1738_v6  ;;  %v1783_v22 = vmul.f32 %v2137_v24, %v1747_v2 }
 0x5b8   :  { %v1761_v55 = vmul.f32 %v2127_v57, %v1714_v47 }
 0x5b9   :  { %v1853_v0 = vrot.slane %v1777_v44, %v2502_v40  ;;  %v2139_v36 = vpop.eup %2138  ;;  %v1865_v25 = vrot.slane %v1783_v22, %v2502_v40 }
 0x5ba   :  { %v1717_v15 = vpop.xlane.xlu1 %1716  ;;  %v1821_v35 = vrot.slane %v1761_v55, %v2502_v40  ;;  %v2141_v61 = vpop.eup %2140 }
 0x5bb   :  { %v1720_v43 = vpop.xlane.xlu0 %1719  ;;  %v1763_v23 = vmul.f32 %v2123_v14, %v1717_v15  ;;  %v1889_v7 = vsel %vm900_vm1, %v1857_v8, %v1853_v0  ;;  %v2143_v17 = vpop.eup %2142  ;;  %v1785_v1 = vmul.f32 %v2141_v61, %v1750_v51 }
 0x5bc   :  { %v1765_v16 = vmul.f32 %v2129_v21, %v1720_v43  ;;  %v2145_v20 = vpop.eup %2144  ;;  %v1890_v26 = vsel %vm902_vm2, %v1861_v27, %v1889_v7 }
 0x5bd   :  { %v1825_v30 = vrot.slane %v1763_v23, %v2502_v40  ;;  %v2147_v4 = vpop.eup %2146  ;;  %v1891_v46 = vsel %vm904_vm3, %v1865_v25, %v1890_v26  ;;  %v1869_v6 = vrot.slane %v1785_v1, %v2502_v40  ;;  %v1998_v23 = vld [vmem:[%s2834_s2 + $0x1] ss:$0 sm:$0xff] }
 0x5be   :  { %v1723_v54 = vpop.xlane.xlu1 %1722  ;;  %v1829_v12 = vrot.slane %v1765_v16, %v2502_v40  ;;  %v2149_v51 = vpop.eup %2148 }
 0x5bf   :  { %v1753_v10 = vpop.xlane.xlu0 %1752  ;;  %v1767_v58 = vmul.f32 %v2131_v53, %v1723_v54  ;;  %v1882_v63 = vsel %vm900_vm1, %v1825_v30, %v1821_v35  ;;  %v1892_v62 = vsel %vm906_vm4, %v1869_v6, %v1891_v46 }
 0x5c0   :  { %v1787_v37 = vmul.f32 %v2143_v17, %v1753_v10  ;;  %v1883_v34 = vsel %vm902_vm2, %v1829_v12, %v1882_v63 }
 0x5c1   :  { %v1833_v28 = vrot.slane %v1767_v58, %v2502_v40 }
 0x5c2   :  { %v1726_v48 = vpop.xlane.xlu1 %1725  ;;  %v1873_v49 = vrot.slane %v1787_v37, %v2502_v40 }
 0x5c3   :  { %v1769_v11 = vmul.f32 %v2133_v19, %v1726_v48  ;;  %v1756_v9 = vpop.xlane.xlu0 %1755  ;;  %v1884_v39 = vsel %vm904_vm3, %v1833_v28, %v1883_v34 }
 0x5c4   :  { %v1789_v33 = vmul.f32 %v2145_v20, %v1756_v9  ;;  %v1893_v14 = vsel %vm908_vm5, %v1873_v49, %v1892_v62 }
 0x5c5   :  { %v1837_v32 = vrot.slane %v1769_v11, %v2502_v40 }
 0x5c6   :  { %v1729_v18 = vpop.xlane.xlu1 %1728  ;;  %v1877_v47 = vrot.slane %v1789_v33, %v2502_v40 }
 0x5c7   :  { %v1771_v5 = vmul.f32 %v2135_v50, %v1729_v18  ;;  %v1885_v38 = vsel %vm906_vm4, %v1837_v32, %v1884_v39 }
 0x5c8   :  { %v1894_v59 = vsel %vm910_vm6, %v1877_v47, %v1893_v14 }
 0x5c9   :  { %v1841_v31 = vrot.slane %v1771_v5, %v2502_v40 }
 0x5ca   :  { %v1732_v56 = vpop.xlane.xlu1 %1731 }
 0x5cb   :  { %v1773_v13 = vmul.f32 %v2139_v36, %v1732_v56  ;;  %v1886_v29 = vsel %vm908_vm5, %v1841_v31, %v1885_v38 }
 0x5cd   :  { %v1845_v42 = vrot.slane %v1773_v13, %v2502_v40 }
 0x5ce   :  { %v1735_v45 = vpop.xlane.xlu1 %1734 }
 0x5cf   :  { %v1775_v41 = vmul.f32 %v2147_v4, %v1735_v45  ;;  %v1887_v54 = vsel %vm910_vm6, %v1845_v42, %v1886_v29 }
 0x5d1   :  { %v1849_v2 = vrot.slane %v1775_v41, %v2502_v40 }
 0x5d2   :  { %v1759_v15 = vpop.xlane.xlu1 %1758 }
 0x5d3   :  { %v1791_v43 = vmul.f32 %v2149_v51, %v1759_v15  ;;  %v1888_v3 = vsel %vm912_vm7, %v1849_v2, %v1887_v54 }
 0x5d4   :  { %2014 = vmatprep.mubr.msk.f32.mxu1 %vm389_vm0, %v1888_v3 }
 0x5d5   :  { %v1881_v48 = vrot.slane %v1791_v43, %v2502_v40 }
 0x5d7   :  { %v1895_v44 = vsel %vm912_vm7, %v1881_v48, %v1894_v59 }
 0x5d8   :  { %2015 = vmatmul.mubr.msk.f32.vlgmr.msra.gmra.mrb[0].mxu1 %vm389_vm0, %v1895_v44 }
 0x6ab   :  { %v2016_v57 = vpop.f32.mrb[0].mxu1 }
 0x6ac   :  { %v1972_v21 = vadd.f32 %v2016_v57, %v1998_v23  ;;  %v1966_v60 = vpop.f32.mrb[1].mxu1 }
 0x6ad   :  { %v1967_v55 = vadd.f32 %v1998_v23, %v1966_v60 }
 0x6ae   :  { %1976 = vst.msk [vmem:[#allocation2 + $0x8] sm:$0xff] %vm389_vm0, %v1972_v21 }
 0x6af   :  { %1975 = vst.msk [vmem:[#allocation2] sm:$0xff] %vm389_vm0, %v1967_v55 }
 0x6b0   :  { %2161 = shalt.err (!%p2158_p4)
}
 0x6b1   :  { %s2162_s26 = scalar_lea.hbm %s2835_s3, 256 }
 0x6b2   :  { %p2163_p5 = scmp.ne.s32.totalorder %s2835_s3, %s2162_s26  ;;  %p2166_p6 = scmp.lt.u32.totalorder %s2162_s26, %s2835_s3 }
 0x6b4   :  { %p2168_p7 = pnand %p2166_p6, %p2163_p5 }
 0x6b6   :  { %2171 = shalt.err (!%p2168_p7)
}
 0x6b7   :  { %s2176_s4 = smov 128   ;;  %s2177_s5 = smov 8  }
 0x6b8   :  { %1988 = dma.vmem_to_hbm [thread:$0]  %s1983_s23, 256, %s2835_s3, [#allocation3], %s2176_s4, %s2176_s4, %s2177_s5  }
 0x6b9   :  { %2172 = dma.done.wait [#allocation3], 256  }
 0x6ba   :  { %2173 = vsyncadd [#allocation3], 4294967040 }
 0x6bb   :  { %1992 = vsyncpa [#allocation3], 1 }

</bundles_post_ra>
